<compile_context>
chip_gen: v5e
topology: v5e:2x2
jax: 0.10.0
libtpu: 0.0.40
codegen_flags: <defaults>
</compile_context>

<pallas_src>
import jax
import jax.numpy as jnp
from jax import lax
from jax.experimental import pallas as pl
from jax.experimental.pallas import tpu as pltpu


def _round_up(x, m):
    return (x + m - 1) // m * m


def _sigmoid(x):
    # Exact sigmoid via tanh: transcendental stays on the EUP, no VALU divide
    # on the serial LSTM chain.
    return 0.5 * jnp.tanh(0.5 * x) + 0.5


def _tpu_vmem_and_cores():
    """(usable physical VMEM bytes per TensorCore, TensorCores per chip)."""
    try:
        kind = jax.devices()[0].device_kind.lower()
    except Exception:
        kind = ""
    if "v7" in kind:
        return 64 << 20, 2      # 64 MiB VMEM per TensorCore, 2 TCs per chip
    if ("v6" in kind or "v5e" in kind or "v5 lite" in kind
            or "v5litepod" in kind):
        return 128 << 20, 1     # 128 MiB VMEM, single TensorCore
    return 64 << 20, 1          # unknown part: conservative


def _padded_f32_bytes(a):
    """VMEM footprint of an f32 array (sublane dim -> 8, lane dim -> 128)."""
    s = a.shape
    if len(s) == 1:
        s = (1,) + s
    lead = 1
    for d in s[:-2]:
        lead *= d
    return lead * _round_up(s[-2], 8) * _round_up(s[-1], 128) * 4


def sta_paras_lstm_mlp(x, params, *, n_tile_max=None, t_chunk_max=32,
                       use_bf16_matmul=False):
    """x: (N, L, F) float32, F = 5 forcing channels + S static attributes
    (statics constant along L, read at t = -1).  Returns (N, outFC)."""
    x = x.astype(jnp.float32)
    N, L, _ = x.shape
    Fin = 5
    (w_in, b_in, w_ih, w_hh, b_lstm,
     w_out, b_out, w1a, w1b, b1, w2, b2) = params
    H = w_in.shape[1]
    G4 = 4 * H
    S = w1b.shape[0]
    O = w_out.shape[1]
    M = w1a.shape[1]
    K = w2.shape[1]

    # ---- time chunking: VMEM stays O(T_CHUNK), not O(L) ---------------------
    t_chunk = min(t_chunk_max, L)
    for d in range(min(t_chunk_max, L), 7, -1):   # prefer a divisor of L
        if L % d == 0:
            t_chunk = d
            break
    ragged = (L % t_chunk) != 0                   # last chunk needs masking
    n_chunks = -(-L // t_chunk)
    l_pad = n_chunks * t_chunk

    # ---- generation-aware VMEM budget & batch tile --------------------------
    vmem_cap, n_cores = _tpu_vmem_and_cores()
    vmem_limit = min(vmem_cap * 3 // 4, 100 << 20)
    if n_tile_max is None:
        n_tile_max = 1024 if n_cores == 1 else 512

    lane = lambda d: _round_up(max(int(d), 1), 128)
    weights = (w_in, b_in, w_ih, b_lstm, w_hh, w_out, b_out,
               w1a, w1b, b1, w2, b2)
    fixed_bytes = 2 * sum(_padded_f32_bytes(w) for w in weights)  # dbl-buffered
    per_row_bytes = 4 * (
        t_chunk * (2 * lane(Fin)      # forcing block, double-buffered
                   + lane(G4)         # packed gates scratch
                   + lane(H)          # x0 intermediate
                   + lane(Fin))       # reshape copy of the forcing block
        + 2 * lane(S)                 # statics block, double-buffered
        + 4 * lane(H)                 # h/c scratch + loop carries
        + 2 * lane(K)                 # output block, double-buffered
        + lane(O) + lane(M))          # head temporaries
    budget = max(vmem_limit - fixed_bytes - (4 << 20), 1 << 20)
    fit = max(8, (budget // per_row_bytes) // 8 * 8)

    n_rows = _round_up(N, 8)
    n_tile = max(8, min(n_tile_max, n_rows, fit))
    n_blocks = -(-n_rows // n_tile)
    if n_cores > 1 and n_rows >= 8 * n_cores:
        # v7x: keep both TensorCores busy with a multiple-of-cores block count.
        n_blocks = _round_up(n_blocks, n_cores)
        n_tile = _round_up(-(-n_rows // n_blocks), 8)
        n_blocks = -(-n_rows // n_tile)
    n_pad = n_blocks * n_tile

    unroll = True if t_chunk <= 16 else 8
    mm_dtype = jnp.bfloat16 if use_bf16_matmul else jnp.float32

    def mm(a, b):
        return jnp.dot(a.astype(mm_dtype), b.astype(mm_dtype),
                       preferred_element_type=jnp.float32)

    def kernel(forcing_ref, static_ref,
               w_in_ref, b_in_ref, w_ih_ref, b_g_ref, w_hh_ref,
               w_out_ref, b_out_ref, w1a_ref, w1b_ref, b1_ref, w2_ref, b2_ref,
               out_ref, gates_ref, h_ref, c_ref):
        cidx = pl.program_id(1)

        @pl.when(cidx == 0)
        def _init():
            h_ref[...] = jnp.zeros_like(h_ref)
            c_ref[...] = jnp.zeros_like(c_ref)

        # -- hoisted, h-independent work for this chunk: ONE lane-dense matmul
        #    (fcIn + x-gate projection), staged in the packed gates scratch.
        frc = forcing_ref[...].reshape(t_chunk * n_tile, Fin)
        x0 = jnp.maximum(mm(frc, w_in_ref[...]) + b_in_ref[...], 0.0)
        gates_ref[...] = (mm(x0, w_ih_ref[...])
                          + b_g_ref[...]).reshape(t_chunk, n_tile, G4)

        # -- serial recurrence over the chunk: only h @ W_hh + gate math.
        w_hh = w_hh_ref[...]
        base = cidx * t_chunk

        def step(t, carry):
            h, c = carry
            g = mm(h, w_hh) + gates_ref[t]               # (n_tile, 4H) packed
            i_g = _sigmoid(g[:, 0 * H:1 * H])
            f_g = _sigmoid(g[:, 1 * H:2 * H])
            g_g = jnp.tanh(g[:, 2 * H:3 * H])
            o_g = _sigmoid(g[:, 3 * H:4 * H])
            c_n = f_g * c + i_g * g_g
            h_n = o_g * jnp.tanh(c_n)
            if ragged:                                   # mask padded tail
                valid = (base + t) < L
                h_n = jnp.where(valid, h_n, h)
                c_n = jnp.where(valid, c_n, c)
            return (h_n, c_n)

        h, c = lax.fori_loop(0, t_chunk, step, (h_ref[...], c_ref[...]),
                             unroll=unroll)
        h_ref[...] = h
        c_ref[...] = c

        # -- fcOut + MLP head, once per batch block (last chunk only).
        @pl.when(cidx == pl.num_programs(1) - 1)
        def _head():
            hf = h_ref[...]
            y = jnp.maximum(mm(hf, w_out_ref[...]) + b_out_ref[...], 0.0)
            z = jnp.maximum(mm(y, w1a_ref[...])
                            + mm(static_ref[...], w1b_ref[...])
                            + b1_ref[...], 0.0)
            out_ref[...] = mm(z, w2_ref[...]) + b2_ref[...]

    # ---- data prep: time-major forcing, statics from the last timestep ------
    forcing = jnp.transpose(x[:, :, :Fin], (1, 0, 2))             # (L, N, 5)
    forcing = jnp.pad(forcing, ((0, l_pad - L), (0, n_pad - N), (0, 0)))
    statics = jnp.pad(x[:, -1, Fin:], ((0, n_pad - N), (0, 0)))   # (n_pad, S)

    args = (forcing, statics, w_in, b_in, w_ih, b_lstm, w_hh,
            w_out, b_out, w1a, w1b, b1, w2, b2)

    def _rep(a):
        nd = a.ndim
        return pl.BlockSpec(a.shape, lambda i, c, _nd=nd: (0,) * _nd)

    in_specs = [
        pl.BlockSpec((t_chunk, n_tile, Fin), lambda i, c: (c, i, 0)),
        pl.BlockSpec((n_tile, S), lambda i, c: (i, 0)),
    ] + [_rep(a) for a in args[2:]]

    out = pl.pallas_call(
        kernel,
        out_shape=jax.ShapeDtypeStruct((n_pad, K), jnp.float32),
        grid=(n_blocks, n_chunks),
        in_specs=in_specs,
        out_specs=pl.BlockSpec((n_tile, K), lambda i, c: (i, 0)),
        scratch_shapes=[
            pltpu.VMEM((t_chunk, n_tile, G4), jnp.float32),  # packed x-gates
            pltpu.VMEM((n_tile, H), jnp.float32),            # h (lives across chunks)
            pltpu.VMEM((n_tile, H), jnp.float32),            # c (lives across chunks)
        ],
        compiler_params=pltpu.CompilerParams(
            dimension_semantics=("parallel", "arbitrary"),
            vmem_limit_bytes=int(vmem_limit)),
    )(*args)
    return out[:N]


def reference(x, params):
    """Pure-JAX reference mirroring the PyTorch forward (eval mode)."""
    (w_in, b_in, w_ih, w_hh, b_lstm,
     w_out, b_out, w1a, w1b, b1, w2, b2) = params
    hp = jax.lax.Precision.HIGHEST
    N, L, F = x.shape
    H = w_in.shape[1]
    forcing = x[:, :, :5]
    static = x[:, -1, 5:]
    x0 = jnp.maximum(jnp.dot(forcing, w_in, precision=hp) + b_in, 0.0)
    h = jnp.zeros((N, H), jnp.float32)
    c = jnp.zeros((N, H), jnp.float32)
    for t in range(L):
        gates = (jnp.dot(x0[:, t, :], w_ih, precision=hp)
                 + jnp.dot(h, w_hh, precision=hp) + b_lstm)
        i = jax.nn.sigmoid(gates[:, 0 * H:1 * H])
        f = jax.nn.sigmoid(gates[:, 1 * H:2 * H])
        g = jnp.tanh(gates[:, 2 * H:3 * H])
        o = jax.nn.sigmoid(gates[:, 3 * H:4 * H])
        c = f * c + i * g
        h = o * jnp.tanh(c)
    y = jnp.maximum(jnp.dot(h, w_out, precision=hp) + b_out, 0.0)
    z1 = jnp.concatenate([y, static], axis=-1)
    w1 = jnp.concatenate([w1a, w1b], axis=0)
    z = jnp.maximum(jnp.dot(z1, w1, precision=hp) + b1, 0.0)
    return jnp.dot(z, w2, precision=hp) + b2


def init_params(key, inLSTM=5, hidLSTM=32, outLSTM=16, nStatic=11,
                hidFC=32, outFC=1):
    H, O, S, M, K = hidLSTM, outLSTM, nStatic, hidFC, outFC
    ks = jax.random.split(key, 12)
    scale = 0.1
    w_in = scale * jax.random.normal(ks[0], (inLSTM, H), jnp.float32)
    b_in = scale * jax.random.normal(ks[1], (1, H), jnp.float32)
    w_ih = scale * jax.random.normal(ks[2], (H, 4 * H), jnp.float32)
    w_hh = scale * jax.random.normal(ks[3], (H, 4 * H), jnp.float32)
    b_lstm = scale * jax.random.normal(ks[4], (1, 4 * H), jnp.float32)  # b_ih+b_hh
    w_out = scale * jax.random.normal(ks[5], (H, O), jnp.float32)
    b_out = scale * jax.random.normal(ks[6], (1, O), jnp.float32)
    w1a = scale * jax.random.normal(ks[7], (O, M), jnp.float32)
    w1b = scale * jax.random.normal(ks[8], (S, M), jnp.float32)
    b1 = scale * jax.random.normal(ks[9], (1, M), jnp.float32)
    w2 = scale * jax.random.normal(ks[10], (M, K), jnp.float32)
    b2 = scale * jax.random.normal(ks[11], (1, K), jnp.float32)
    return (w_in, b_in, w_ih, w_hh, b_lstm, w_out, b_out,
            w1a, w1b, b1, w2, b2)


if __name__ == "__main__":
    key = jax.random.PRNGKey(0)
    k_p, k_f, k_s = jax.random.split(key, 3)

    N, L = 2, 8                 # batch, sequence length
    n_forcing, n_static = 5, 11
    params = init_params(k_p, inLSTM=n_forcing, hidLSTM=32, outLSTM=16,
                         nStatic=n_static, hidFC=32, outFC=1)

    forcing = jax.random.normal(k_f, (N, L, n_forcing), jnp.float32)
    statics = jax.random.normal(k_s, (N, 1, n_static), jnp.float32)
    statics = jnp.broadcast_to(statics, (N, L, n_static))  # constant along L
    x = jnp.concatenate([forcing, statics], axis=-1)        # (N, L, 16)

    out = jax.jit(sta_paras_lstm_mlp)(x, params)
    out = jax.block_until_ready(out)

    ref = reference(x, params)
    assert out.shape == ref.shape == (N, 1)
    assert bool(jnp.all(jnp.isfinite(out)))
    assert bool(jnp.allclose(out, ref, rtol=2e-3, atol=2e-3)), (out, ref)

    print("KERNEL_OK")
</pallas_src>

<mosaic_0001>
module attributes {stable_mosaic.version = 11 : i64} {
  func.func @kernel(%arg0: i32, %arg1: i32, %arg2: memref<8x8x5xf32, #tpu.memory_space<vmem>>, %arg3: memref<8x11xf32, #tpu.memory_space<vmem>>, %arg4: memref<5x32xf32, #tpu.memory_space<vmem>>, %arg5: memref<1x32xf32, #tpu.memory_space<vmem>>, %arg6: memref<32x128xf32, #tpu.memory_space<vmem>>, %arg7: memref<1x128xf32, #tpu.memory_space<vmem>>, %arg8: memref<32x128xf32, #tpu.memory_space<vmem>>, %arg9: memref<32x16xf32, #tpu.memory_space<vmem>>, %arg10: memref<1x16xf32, #tpu.memory_space<vmem>>, %arg11: memref<16x32xf32, #tpu.memory_space<vmem>>, %arg12: memref<11x32xf32, #tpu.memory_space<vmem>>, %arg13: memref<1x32xf32, #tpu.memory_space<vmem>>, %arg14: memref<32x1xf32, #tpu.memory_space<vmem>>, %arg15: memref<1x1xf32, #tpu.memory_space<vmem>>, %arg16: memref<8x1xf32, #tpu.memory_space<vmem>>, %arg17: memref<8x8x128xf32, #tpu.memory_space<vmem>>, %arg18: memref<8x32xf32, #tpu.memory_space<vmem>>, %arg19: memref<8x32xf32, #tpu.memory_space<vmem>>) attributes {dimension_semantics = [#tpu.dimension_semantics<parallel>, #tpu.dimension_semantics<arbitrary>], iteration_bounds = array<i64: 1, 1>, scalar_prefetch = 0 : i64, scratch_operands = 3 : i64, tpu.core_type = #tpu.core_type<tc>, window_params = [{transform_indices = @transform_0, window_bounds = array<i64: 8, 8, 5>}, {transform_indices = @transform_1, window_bounds = array<i64: 8, 11>}, {pipeline_mode = #tpu.pipeline_mode<synchronous>, transform_indices = @transform_2, window_bounds = array<i64: 5, 32>}, {pipeline_mode = #tpu.pipeline_mode<synchronous>, transform_indices = @transform_3, window_bounds = array<i64: 1, 32>}, {pipeline_mode = #tpu.pipeline_mode<synchronous>, transform_indices = @transform_4, window_bounds = array<i64: 32, 128>}, {pipeline_mode = #tpu.pipeline_mode<synchronous>, transform_indices = @transform_5, window_bounds = array<i64: 1, 128>}, {pipeline_mode = #tpu.pipeline_mode<synchronous>, transform_indices = @transform_6, window_bounds = array<i64: 32, 128>}, {pipeline_mode = #tpu.pipeline_mode<synchronous>, transform_indices = @transform_7, window_bounds = array<i64: 32, 16>}, {pipeline_mode = #tpu.pipeline_mode<synchronous>, transform_indices = @transform_8, window_bounds = array<i64: 1, 16>}, {pipeline_mode = #tpu.pipeline_mode<synchronous>, transform_indices = @transform_9, window_bounds = array<i64: 16, 32>}, {pipeline_mode = #tpu.pipeline_mode<synchronous>, transform_indices = @transform_10, window_bounds = array<i64: 11, 32>}, {pipeline_mode = #tpu.pipeline_mode<synchronous>, transform_indices = @transform_11, window_bounds = array<i64: 1, 32>}, {pipeline_mode = #tpu.pipeline_mode<synchronous>, transform_indices = @transform_12, window_bounds = array<i64: 32, 1>}, {pipeline_mode = #tpu.pipeline_mode<synchronous>, transform_indices = @transform_13, window_bounds = array<i64: 1, 1>}, {transform_indices = @transform_14, window_bounds = array<i64: 8, 1>}]} {
    %c0_i32 = arith.constant 0 : i32
    %0 = arith.cmpi eq, %arg1, %c0_i32 : i32
    %1 = arith.extui %0 : i1 to i32
    %c0_i32_0 = arith.constant 0 : i32
    %2 = arith.cmpi ne, %1, %c0_i32_0 : i32
    scf.if %2 {
      %cst_125 = arith.constant 0.000000e+00 : f32
      %315 = vector.broadcast %cst_125 : f32 to vector<8x32xf32>
      %c0_126 = arith.constant 0 : index
      %c0_127 = arith.constant 0 : index
      %316 = vector.load %arg18[%c0_126, %c0_127] : memref<8x32xf32, #tpu.memory_space<vmem>>, vector<8x32xf32>
      tpu.vector_store %arg18[%c0_126, %c0_127], %315 {strides = array<i32>} : memref<8x32xf32, #tpu.memory_space<vmem>>, vector<8x32xf32>,
      %cst_128 = arith.constant 0.000000e+00 : f32
      %317 = vector.broadcast %cst_128 : f32 to vector<8x32xf32>
      %c0_129 = arith.constant 0 : index
      %c0_130 = arith.constant 0 : index
      %318 = vector.load %arg19[%c0_129, %c0_130] : memref<8x32xf32, #tpu.memory_space<vmem>>, vector<8x32xf32>
      tpu.vector_store %arg19[%c0_129, %c0_130], %317 {strides = array<i32>} : memref<8x32xf32, #tpu.memory_space<vmem>>, vector<8x32xf32>,
    } else {
    }
    %c0 = arith.constant 0 : index
    %c0_1 = arith.constant 0 : index
    %c0_2 = arith.constant 0 : index
    %3 = vector.load %arg2[%c0, %c0_1, %c0_2] : memref<8x8x5xf32, #tpu.memory_space<vmem>>, vector<8x8x5xf32>
    %4 = vector.shape_cast %3 : vector<8x8x5xf32> to vector<64x5xf32>
    %c0_3 = arith.constant 0 : index
    %c0_4 = arith.constant 0 : index
    %5 = vector.load %arg4[%c0_3, %c0_4] : memref<5x32xf32, #tpu.memory_space<vmem>>, vector<5x32xf32>
    %cst = arith.constant dense<0.000000e+00> : vector<64x32xf32>
    %6 = tpu.matmul %4, %5, %cst {dimension_numbers = #tpu.dot_dimension_numbers<[1], [0], [0], [1], [0, 0, 1, 1], [], []>} : vector<64x5xf32>, vector<5x32xf32>, vector<64x32xf32> -> vector<64x32xf32>
    %c0_5 = arith.constant 0 : index
    %c0_6 = arith.constant 0 : index
    %7 = vector.load %arg5[%c0_5, %c0_6] : memref<1x32xf32, #tpu.memory_space<vmem>>, vector<1x32xf32>
    %8 = vector.broadcast %7 : vector<1x32xf32> to vector<64x32xf32>
    %9 = arith.addf %6, %8 : vector<64x32xf32>
    %cst_7 = arith.constant 0.000000e+00 : f32
    %10 = vector.broadcast %cst_7 : f32 to vector<64x32xf32>
    %11 = arith.maximumf %9, %10 : vector<64x32xf32>
    %c0_8 = arith.constant 0 : index
    %c0_9 = arith.constant 0 : index
    %12 = vector.load %arg6[%c0_8, %c0_9] : memref<32x128xf32, #tpu.memory_space<vmem>>, vector<32x128xf32>
    %cst_10 = arith.constant dense<0.000000e+00> : vector<64x128xf32>
    %13 = tpu.matmul %11, %12, %cst_10 {dimension_numbers = #tpu.dot_dimension_numbers<[1], [0], [0], [1], [0, 0, 1, 1], [], []>} : vector<64x32xf32>, vector<32x128xf32>, vector<64x128xf32> -> vector<64x128xf32>
    %c0_11 = arith.constant 0 : index
    %c0_12 = arith.constant 0 : index
    %14 = vector.load %arg7[%c0_11, %c0_12] : memref<1x128xf32, #tpu.memory_space<vmem>>, vector<1x128xf32>
    %15 = vector.broadcast %14 : vector<1x128xf32> to vector<64x128xf32>
    %16 = arith.addf %13, %15 : vector<64x128xf32>
    %17 = vector.shape_cast %16 : vector<64x128xf32> to vector<8x8x128xf32>
    %c0_13 = arith.constant 0 : index
    %c0_14 = arith.constant 0 : index
    %c0_15 = arith.constant 0 : index
    %18 = vector.load %arg17[%c0_13, %c0_14, %c0_15] : memref<8x8x128xf32, #tpu.memory_space<vmem>>, vector<8x8x128xf32>
    tpu.vector_store %arg17[%c0_13, %c0_14, %c0_15], %17 {strides = array<i32>} : memref<8x8x128xf32, #tpu.memory_space<vmem>>, vector<8x8x128xf32>,
    %c0_16 = arith.constant 0 : index
    %c0_17 = arith.constant 0 : index
    %19 = vector.load %arg8[%c0_16, %c0_17] : memref<32x128xf32, #tpu.memory_space<vmem>>, vector<32x128xf32>
    %c0_18 = arith.constant 0 : index
    %c0_19 = arith.constant 0 : index
    %20 = vector.load %arg18[%c0_18, %c0_19] : memref<8x32xf32, #tpu.memory_space<vmem>>, vector<8x32xf32>
    %c0_20 = arith.constant 0 : index
    %c0_21 = arith.constant 0 : index
    %21 = vector.load %arg19[%c0_20, %c0_21] : memref<8x32xf32, #tpu.memory_space<vmem>>, vector<8x32xf32>
    %c0_i32_22 = arith.constant 0 : i32
    %cst_23 = arith.constant dense<0.000000e+00> : vector<8x128xf32>
    %22 = tpu.matmul %20, %19, %cst_23 {dimension_numbers = #tpu.dot_dimension_numbers<[1], [0], [0], [1], [0, 0, 1, 1], [], []>} : vector<8x32xf32>, vector<32x128xf32>, vector<8x128xf32> -> vector<8x128xf32>
    %23 = arith.index_cast %c0_i32_22 : i32 to index
    %c0_24 = arith.constant 0 : index
    %c0_25 = arith.constant 0 : index
    %24 = vector.load %arg17[%23, %c0_24, %c0_25] : memref<8x8x128xf32, #tpu.memory_space<vmem>>, vector<1x8x128xf32>
    %25 = vector.shape_cast %24 : vector<1x8x128xf32> to vector<8x128xf32>
    %26 = arith.addf %22, %25 : vector<8x128xf32>
    %27 = vector.extract_strided_slice %26 {offsets = [0, 0], sizes = [8, 32], strides = [1, 1]} : vector<8x128xf32> to vector<8x32xf32>
    %cst_26 = arith.constant 5.000000e-01 : f32
    %28 = vector.broadcast %cst_26 : f32 to vector<8x32xf32>
    %29 = arith.mulf %28, %27 : vector<8x32xf32>
    %30 = math.tanh %29 : vector<8x32xf32>
    %cst_27 = arith.constant 5.000000e-01 : f32
    %31 = vector.broadcast %cst_27 : f32 to vector<8x32xf32>
    %32 = arith.mulf %31, %30 : vector<8x32xf32>
    %cst_28 = arith.constant 5.000000e-01 : f32
    %33 = vector.broadcast %cst_28 : f32 to vector<8x32xf32>
    %34 = arith.addf %32, %33 : vector<8x32xf32>
    %35 = vector.extract_strided_slice %26 {offsets = [0, 32], sizes = [8, 32], strides = [1, 1]} : vector<8x128xf32> to vector<8x32xf32>
    %cst_29 = arith.constant 5.000000e-01 : f32
    %36 = vector.broadcast %cst_29 : f32 to vector<8x32xf32>
    %37 = arith.mulf %36, %35 : vector<8x32xf32>
    %38 = math.tanh %37 : vector<8x32xf32>
    %cst_30 = arith.constant 5.000000e-01 : f32
    %39 = vector.broadcast %cst_30 : f32 to vector<8x32xf32>
    %40 = arith.mulf %39, %38 : vector<8x32xf32>
    %cst_31 = arith.constant 5.000000e-01 : f32
    %41 = vector.broadcast %cst_31 : f32 to vector<8x32xf32>
    %42 = arith.addf %40, %41 : vector<8x32xf32>
    %43 = vector.extract_strided_slice %26 {offsets = [0, 64], sizes = [8, 32], strides = [1, 1]} : vector<8x128xf32> to vector<8x32xf32>
    %44 = math.tanh %43 : vector<8x32xf32>
    %45 = vector.extract_strided_slice %26 {offsets = [0, 96], sizes = [8, 32], strides = [1, 1]} : vector<8x128xf32> to vector<8x32xf32>
    %cst_32 = arith.constant 5.000000e-01 : f32
    %46 = vector.broadcast %cst_32 : f32 to vector<8x32xf32>
    %47 = arith.mulf %46, %45 : vector<8x32xf32>
    %48 = math.tanh %47 : vector<8x32xf32>
    %cst_33 = arith.constant 5.000000e-01 : f32
    %49 = vector.broadcast %cst_33 : f32 to vector<8x32xf32>
    %50 = arith.mulf %49, %48 : vector<8x32xf32>
    %cst_34 = arith.constant 5.000000e-01 : f32
    %51 = vector.broadcast %cst_34 : f32 to vector<8x32xf32>
    %52 = arith.addf %50, %51 : vector<8x32xf32>
    %53 = arith.mulf %42, %21 : vector<8x32xf32>
    %54 = arith.mulf %34, %44 : vector<8x32xf32>
    %55 = arith.addf %53, %54 : vector<8x32xf32>
    %56 = math.tanh %55 : vector<8x32xf32>
    %57 = arith.mulf %52, %56 : vector<8x32xf32>
    %c1_i32 = arith.constant 1 : i32
    %cst_35 = arith.constant dense<0.000000e+00> : vector<8x128xf32>
    %58 = tpu.matmul %57, %19, %cst_35 {dimension_numbers = #tpu.dot_dimension_numbers<[1], [0], [0], [1], [0, 0, 1, 1], [], []>} : vector<8x32xf32>, vector<32x128xf32>, vector<8x128xf32> -> vector<8x128xf32>
    %59 = arith.index_cast %c1_i32 : i32 to index
    %c0_36 = arith.constant 0 : index
    %c0_37 = arith.constant 0 : index
    %60 = vector.load %arg17[%59, %c0_36, %c0_37] : memref<8x8x128xf32, #tpu.memory_space<vmem>>, vector<1x8x128xf32>
    %61 = vector.shape_cast %60 : vector<1x8x128xf32> to vector<8x128xf32>
    %62 = arith.addf %58, %61 : vector<8x128xf32>
    %63 = vector.extract_strided_slice %62 {offsets = [0, 0], sizes = [8, 32], strides = [1, 1]} : vector<8x128xf32> to vector<8x32xf32>
    %cst_38 = arith.constant 5.000000e-01 : f32
    %64 = vector.broadcast %cst_38 : f32 to vector<8x32xf32>
    %65 = arith.mulf %64, %63 : vector<8x32xf32>
    %66 = math.tanh %65 : vector<8x32xf32>
    %cst_39 = arith.constant 5.000000e-01 : f32
    %67 = vector.broadcast %cst_39 : f32 to vector<8x32xf32>
    %68 = arith.mulf %67, %66 : vector<8x32xf32>
    %cst_40 = arith.constant 5.000000e-01 : f32
    %69 = vector.broadcast %cst_40 : f32 to vector<8x32xf32>
    %70 = arith.addf %68, %69 : vector<8x32xf32>
    %71 = vector.extract_strided_slice %62 {offsets = [0, 32], sizes = [8, 32], strides = [1, 1]} : vector<8x128xf32> to vector<8x32xf32>
    %cst_41 = arith.constant 5.000000e-01 : f32
    %72 = vector.broadcast %cst_41 : f32 to vector<8x32xf32>
    %73 = arith.mulf %72, %71 : vector<8x32xf32>
    %74 = math.tanh %73 : vector<8x32xf32>
    %cst_42 = arith.constant 5.000000e-01 : f32
    %75 = vector.broadcast %cst_42 : f32 to vector<8x32xf32>
    %76 = arith.mulf %75, %74 : vector<8x32xf32>
    %cst_43 = arith.constant 5.000000e-01 : f32
    %77 = vector.broadcast %cst_43 : f32 to vector<8x32xf32>
    %78 = arith.addf %76, %77 : vector<8x32xf32>
    %79 = vector.extract_strided_slice %62 {offsets = [0, 64], sizes = [8, 32], strides = [1, 1]} : vector<8x128xf32> to vector<8x32xf32>
    %80 = math.tanh %79 : vector<8x32xf32>
    %81 = vector.extract_strided_slice %62 {offsets = [0, 96], sizes = [8, 32], strides = [1, 1]} : vector<8x128xf32> to vector<8x32xf32>
    %cst_44 = arith.constant 5.000000e-01 : f32
    %82 = vector.broadcast %cst_44 : f32 to vector<8x32xf32>
    %83 = arith.mulf %82, %81 : vector<8x32xf32>
    %84 = math.tanh %83 : vector<8x32xf32>
    %cst_45 = arith.constant 5.000000e-01 : f32
    %85 = vector.broadcast %cst_45 : f32 to vector<8x32xf32>
    %86 = arith.mulf %85, %84 : vector<8x32xf32>
    %cst_46 = arith.constant 5.000000e-01 : f32
    %87 = vector.broadcast %cst_46 : f32 to vector<8x32xf32>
    %88 = arith.addf %86, %87 : vector<8x32xf32>
    %89 = arith.mulf %78, %55 : vector<8x32xf32>
    %90 = arith.mulf %70, %80 : vector<8x32xf32>
    %91 = arith.addf %89, %90 : vector<8x32xf32>
    %92 = math.tanh %91 : vector<8x32xf32>
    %93 = arith.mulf %88, %92 : vector<8x32xf32>
    %c2_i32 = arith.constant 2 : i32
    %cst_47 = arith.constant dense<0.000000e+00> : vector<8x128xf32>
    %94 = tpu.matmul %93, %19, %cst_47 {dimension_numbers = #tpu.dot_dimension_numbers<[1], [0], [0], [1], [0, 0, 1, 1], [], []>} : vector<8x32xf32>, vector<32x128xf32>, vector<8x128xf32> -> vector<8x128xf32>
    %95 = arith.index_cast %c2_i32 : i32 to index
    %c0_48 = arith.constant 0 : index
    %c0_49 = arith.constant 0 : index
    %96 = vector.load %arg17[%95, %c0_48, %c0_49] : memref<8x8x128xf32, #tpu.memory_space<vmem>>, vector<1x8x128xf32>
    %97 = vector.shape_cast %96 : vector<1x8x128xf32> to vector<8x128xf32>
    %98 = arith.addf %94, %97 : vector<8x128xf32>
    %99 = vector.extract_strided_slice %98 {offsets = [0, 0], sizes = [8, 32], strides = [1, 1]} : vector<8x128xf32> to vector<8x32xf32>
    %cst_50 = arith.constant 5.000000e-01 : f32
    %100 = vector.broadcast %cst_50 : f32 to vector<8x32xf32>
    %101 = arith.mulf %100, %99 : vector<8x32xf32>
    %102 = math.tanh %101 : vector<8x32xf32>
    %cst_51 = arith.constant 5.000000e-01 : f32
    %103 = vector.broadcast %cst_51 : f32 to vector<8x32xf32>
    %104 = arith.mulf %103, %102 : vector<8x32xf32>
    %cst_52 = arith.constant 5.000000e-01 : f32
    %105 = vector.broadcast %cst_52 : f32 to vector<8x32xf32>
    %106 = arith.addf %104, %105 : vector<8x32xf32>
    %107 = vector.extract_strided_slice %98 {offsets = [0, 32], sizes = [8, 32], strides = [1, 1]} : vector<8x128xf32> to vector<8x32xf32>
    %cst_53 = arith.constant 5.000000e-01 : f32
    %108 = vector.broadcast %cst_53 : f32 to vector<8x32xf32>
    %109 = arith.mulf %108, %107 : vector<8x32xf32>
    %110 = math.tanh %109 : vector<8x32xf32>
    %cst_54 = arith.constant 5.000000e-01 : f32
    %111 = vector.broadcast %cst_54 : f32 to vector<8x32xf32>
    %112 = arith.mulf %111, %110 : vector<8x32xf32>
    %cst_55 = arith.constant 5.000000e-01 : f32
    %113 = vector.broadcast %cst_55 : f32 to vector<8x32xf32>
    %114 = arith.addf %112, %113 : vector<8x32xf32>
    %115 = vector.extract_strided_slice %98 {offsets = [0, 64], sizes = [8, 32], strides = [1, 1]} : vector<8x128xf32> to vector<8x32xf32>
    %116 = math.tanh %115 : vector<8x32xf32>
    %117 = vector.extract_strided_slice %98 {offsets = [0, 96], sizes = [8, 32], strides = [1, 1]} : vector<8x128xf32> to vector<8x32xf32>
    %cst_56 = arith.constant 5.000000e-01 : f32
    %118 = vector.broadcast %cst_56 : f32 to vector<8x32xf32>
    %119 = arith.mulf %118, %117 : vector<8x32xf32>
    %120 = math.tanh %119 : vector<8x32xf32>
    %cst_57 = arith.constant 5.000000e-01 : f32
    %121 = vector.broadcast %cst_57 : f32 to vector<8x32xf32>
    %122 = arith.mulf %121, %120 : vector<8x32xf32>
    %cst_58 = arith.constant 5.000000e-01 : f32
    %123 = vector.broadcast %cst_58 : f32 to vector<8x32xf32>
    %124 = arith.addf %122, %123 : vector<8x32xf32>
    %125 = arith.mulf %114, %91 : vector<8x32xf32>
    %126 = arith.mulf %106, %116 : vector<8x32xf32>
    %127 = arith.addf %125, %126 : vector<8x32xf32>
    %128 = math.tanh %127 : vector<8x32xf32>
    %129 = arith.mulf %124, %128 : vector<8x32xf32>
    %c3_i32 = arith.constant 3 : i32
    %cst_59 = arith.constant dense<0.000000e+00> : vector<8x128xf32>
    %130 = tpu.matmul %129, %19, %cst_59 {dimension_numbers = #tpu.dot_dimension_numbers<[1], [0], [0], [1], [0, 0, 1, 1], [], []>} : vector<8x32xf32>, vector<32x128xf32>, vector<8x128xf32> -> vector<8x128xf32>
    %131 = arith.index_cast %c3_i32 : i32 to index
    %c0_60 = arith.constant 0 : index
    %c0_61 = arith.constant 0 : index
    %132 = vector.load %arg17[%131, %c0_60, %c0_61] : memref<8x8x128xf32, #tpu.memory_space<vmem>>, vector<1x8x128xf32>
    %133 = vector.shape_cast %132 : vector<1x8x128xf32> to vector<8x128xf32>
    %134 = arith.addf %130, %133 : vector<8x128xf32>
    %135 = vector.extract_strided_slice %134 {offsets = [0, 0], sizes = [8, 32], strides = [1, 1]} : vector<8x128xf32> to vector<8x32xf32>
    %cst_62 = arith.constant 5.000000e-01 : f32
    %136 = vector.broadcast %cst_62 : f32 to vector<8x32xf32>
    %137 = arith.mulf %136, %135 : vector<8x32xf32>
    %138 = math.tanh %137 : vector<8x32xf32>
    %cst_63 = arith.constant 5.000000e-01 : f32
    %139 = vector.broadcast %cst_63 : f32 to vector<8x32xf32>
    %140 = arith.mulf %139, %138 : vector<8x32xf32>
    %cst_64 = arith.constant 5.000000e-01 : f32
    %141 = vector.broadcast %cst_64 : f32 to vector<8x32xf32>
    %142 = arith.addf %140, %141 : vector<8x32xf32>
    %143 = vector.extract_strided_slice %134 {offsets = [0, 32], sizes = [8, 32], strides = [1, 1]} : vector<8x128xf32> to vector<8x32xf32>
    %cst_65 = arith.constant 5.000000e-01 : f32
    %144 = vector.broadcast %cst_65 : f32 to vector<8x32xf32>
    %145 = arith.mulf %144, %143 : vector<8x32xf32>
    %146 = math.tanh %145 : vector<8x32xf32>
    %cst_66 = arith.constant 5.000000e-01 : f32
    %147 = vector.broadcast %cst_66 : f32 to vector<8x32xf32>
    %148 = arith.mulf %147, %146 : vector<8x32xf32>
    %cst_67 = arith.constant 5.000000e-01 : f32
    %149 = vector.broadcast %cst_67 : f32 to vector<8x32xf32>
    %150 = arith.addf %148, %149 : vector<8x32xf32>
    %151 = vector.extract_strided_slice %134 {offsets = [0, 64], sizes = [8, 32], strides = [1, 1]} : vector<8x128xf32> to vector<8x32xf32>
    %152 = math.tanh %151 : vector<8x32xf32>
    %153 = vector.extract_strided_slice %134 {offsets = [0, 96], sizes = [8, 32], strides = [1, 1]} : vector<8x128xf32> to vector<8x32xf32>
    %cst_68 = arith.constant 5.000000e-01 : f32
    %154 = vector.broadcast %cst_68 : f32 to vector<8x32xf32>
    %155 = arith.mulf %154, %153 : vector<8x32xf32>
    %156 = math.tanh %155 : vector<8x32xf32>
    %cst_69 = arith.constant 5.000000e-01 : f32
    %157 = vector.broadcast %cst_69 : f32 to vector<8x32xf32>
    %158 = arith.mulf %157, %156 : vector<8x32xf32>
    %cst_70 = arith.constant 5.000000e-01 : f32
    %159 = vector.broadcast %cst_70 : f32 to vector<8x32xf32>
    %160 = arith.addf %158, %159 : vector<8x32xf32>
    %161 = arith.mulf %150, %127 : vector<8x32xf32>
    %162 = arith.mulf %142, %152 : vector<8x32xf32>
    %163 = arith.addf %161, %162 : vector<8x32xf32>
    %164 = math.tanh %163 : vector<8x32xf32>
    %165 = arith.mulf %160, %164 : vector<8x32xf32>
    %c4_i32 = arith.constant 4 : i32
    %cst_71 = arith.constant dense<0.000000e+00> : vector<8x128xf32>
    %166 = tpu.matmul %165, %19, %cst_71 {dimension_numbers = #tpu.dot_dimension_numbers<[1], [0], [0], [1], [0, 0, 1, 1], [], []>} : vector<8x32xf32>, vector<32x128xf32>, vector<8x128xf32> -> vector<8x128xf32>
    %167 = arith.index_cast %c4_i32 : i32 to index
    %c0_72 = arith.constant 0 : index
    %c0_73 = arith.constant 0 : index
    %168 = vector.load %arg17[%167, %c0_72, %c0_73] : memref<8x8x128xf32, #tpu.memory_space<vmem>>, vector<1x8x128xf32>
    %169 = vector.shape_cast %168 : vector<1x8x128xf32> to vector<8x128xf32>
    %170 = arith.addf %166, %169 : vector<8x128xf32>
    %171 = vector.extract_strided_slice %170 {offsets = [0, 0], sizes = [8, 32], strides = [1, 1]} : vector<8x128xf32> to vector<8x32xf32>
    %cst_74 = arith.constant 5.000000e-01 : f32
    %172 = vector.broadcast %cst_74 : f32 to vector<8x32xf32>
    %173 = arith.mulf %172, %171 : vector<8x32xf32>
    %174 = math.tanh %173 : vector<8x32xf32>
    %cst_75 = arith.constant 5.000000e-01 : f32
    %175 = vector.broadcast %cst_75 : f32 to vector<8x32xf32>
    %176 = arith.mulf %175, %174 : vector<8x32xf32>
    %cst_76 = arith.constant 5.000000e-01 : f32
    %177 = vector.broadcast %cst_76 : f32 to vector<8x32xf32>
    %178 = arith.addf %176, %177 : vector<8x32xf32>
    %179 = vector.extract_strided_slice %170 {offsets = [0, 32], sizes = [8, 32], strides = [1, 1]} : vector<8x128xf32> to vector<8x32xf32>
    %cst_77 = arith.constant 5.000000e-01 : f32
    %180 = vector.broadcast %cst_77 : f32 to vector<8x32xf32>
    %181 = arith.mulf %180, %179 : vector<8x32xf32>
    %182 = math.tanh %181 : vector<8x32xf32>
    %cst_78 = arith.constant 5.000000e-01 : f32
    %183 = vector.broadcast %cst_78 : f32 to vector<8x32xf32>
    %184 = arith.mulf %183, %182 : vector<8x32xf32>
    %cst_79 = arith.constant 5.000000e-01 : f32
    %185 = vector.broadcast %cst_79 : f32 to vector<8x32xf32>
    %186 = arith.addf %184, %185 : vector<8x32xf32>
    %187 = vector.extract_strided_slice %170 {offsets = [0, 64], sizes = [8, 32], strides = [1, 1]} : vector<8x128xf32> to vector<8x32xf32>
    %188 = math.tanh %187 : vector<8x32xf32>
    %189 = vector.extract_strided_slice %170 {offsets = [0, 96], sizes = [8, 32], strides = [1, 1]} : vector<8x128xf32> to vector<8x32xf32>
    %cst_80 = arith.constant 5.000000e-01 : f32
    %190 = vector.broadcast %cst_80 : f32 to vector<8x32xf32>
    %191 = arith.mulf %190, %189 : vector<8x32xf32>
    %192 = math.tanh %191 : vector<8x32xf32>
    %cst_81 = arith.constant 5.000000e-01 : f32
    %193 = vector.broadcast %cst_81 : f32 to vector<8x32xf32>
    %194 = arith.mulf %193, %192 : vector<8x32xf32>
    %cst_82 = arith.constant 5.000000e-01 : f32
    %195 = vector.broadcast %cst_82 : f32 to vector<8x32xf32>
    %196 = arith.addf %194, %195 : vector<8x32xf32>
    %197 = arith.mulf %186, %163 : vector<8x32xf32>
    %198 = arith.mulf %178, %188 : vector<8x32xf32>
    %199 = arith.addf %197, %198 : vector<8x32xf32>
    %200 = math.tanh %199 : vector<8x32xf32>
    %201 = arith.mulf %196, %200 : vector<8x32xf32>
    %c5_i32 = arith.constant 5 : i32
    %cst_83 = arith.constant dense<0.000000e+00> : vector<8x128xf32>
    %202 = tpu.matmul %201, %19, %cst_83 {dimension_numbers = #tpu.dot_dimension_numbers<[1], [0], [0], [1], [0, 0, 1, 1], [], []>} : vector<8x32xf32>, vector<32x128xf32>, vector<8x128xf32> -> vector<8x128xf32>
    %203 = arith.index_cast %c5_i32 : i32 to index
    %c0_84 = arith.constant 0 : index
    %c0_85 = arith.constant 0 : index
    %204 = vector.load %arg17[%203, %c0_84, %c0_85] : memref<8x8x128xf32, #tpu.memory_space<vmem>>, vector<1x8x128xf32>
    %205 = vector.shape_cast %204 : vector<1x8x128xf32> to vector<8x128xf32>
    %206 = arith.addf %202, %205 : vector<8x128xf32>
    %207 = vector.extract_strided_slice %206 {offsets = [0, 0], sizes = [8, 32], strides = [1, 1]} : vector<8x128xf32> to vector<8x32xf32>
    %cst_86 = arith.constant 5.000000e-01 : f32
    %208 = vector.broadcast %cst_86 : f32 to vector<8x32xf32>
    %209 = arith.mulf %208, %207 : vector<8x32xf32>
    %210 = math.tanh %209 : vector<8x32xf32>
    %cst_87 = arith.constant 5.000000e-01 : f32
    %211 = vector.broadcast %cst_87 : f32 to vector<8x32xf32>
    %212 = arith.mulf %211, %210 : vector<8x32xf32>
    %cst_88 = arith.constant 5.000000e-01 : f32
    %213 = vector.broadcast %cst_88 : f32 to vector<8x32xf32>
    %214 = arith.addf %212, %213 : vector<8x32xf32>
    %215 = vector.extract_strided_slice %206 {offsets = [0, 32], sizes = [8, 32], strides = [1, 1]} : vector<8x128xf32> to vector<8x32xf32>
    %cst_89 = arith.constant 5.000000e-01 : f32
    %216 = vector.broadcast %cst_89 : f32 to vector<8x32xf32>
    %217 = arith.mulf %216, %215 : vector<8x32xf32>
    %218 = math.tanh %217 : vector<8x32xf32>
    %cst_90 = arith.constant 5.000000e-01 : f32
    %219 = vector.broadcast %cst_90 : f32 to vector<8x32xf32>
    %220 = arith.mulf %219, %218 : vector<8x32xf32>
    %cst_91 = arith.constant 5.000000e-01 : f32
    %221 = vector.broadcast %cst_91 : f32 to vector<8x32xf32>
    %222 = arith.addf %220, %221 : vector<8x32xf32>
    %223 = vector.extract_strided_slice %206 {offsets = [0, 64], sizes = [8, 32], strides = [1, 1]} : vector<8x128xf32> to vector<8x32xf32>
    %224 = math.tanh %223 : vector<8x32xf32>
    %225 = vector.extract_strided_slice %206 {offsets = [0, 96], sizes = [8, 32], strides = [1, 1]} : vector<8x128xf32> to vector<8x32xf32>
    %cst_92 = arith.constant 5.000000e-01 : f32
    %226 = vector.broadcast %cst_92 : f32 to vector<8x32xf32>
    %227 = arith.mulf %226, %225 : vector<8x32xf32>
    %228 = math.tanh %227 : vector<8x32xf32>
    %cst_93 = arith.constant 5.000000e-01 : f32
    %229 = vector.broadcast %cst_93 : f32 to vector<8x32xf32>
    %230 = arith.mulf %229, %228 : vector<8x32xf32>
    %cst_94 = arith.constant 5.000000e-01 : f32
    %231 = vector.broadcast %cst_94 : f32 to vector<8x32xf32>
    %232 = arith.addf %230, %231 : vector<8x32xf32>
    %233 = arith.mulf %222, %199 : vector<8x32xf32>
    %234 = arith.mulf %214, %224 : vector<8x32xf32>
    %235 = arith.addf %233, %234 : vector<8x32xf32>
    %236 = math.tanh %235 : vector<8x32xf32>
    %237 = arith.mulf %232, %236 : vector<8x32xf32>
    %c6_i32 = arith.constant 6 : i32
    %cst_95 = arith.constant dense<0.000000e+00> : vector<8x128xf32>
    %238 = tpu.matmul %237, %19, %cst_95 {dimension_numbers = #tpu.dot_dimension_numbers<[1], [0], [0], [1], [0, 0, 1, 1], [], []>} : vector<8x32xf32>, vector<32x128xf32>, vector<8x128xf32> -> vector<8x128xf32>
    %239 = arith.index_cast %c6_i32 : i32 to index
    %c0_96 = arith.constant 0 : index
    %c0_97 = arith.constant 0 : index
    %240 = vector.load %arg17[%239, %c0_96, %c0_97] : memref<8x8x128xf32, #tpu.memory_space<vmem>>, vector<1x8x128xf32>
    %241 = vector.shape_cast %240 : vector<1x8x128xf32> to vector<8x128xf32>
    %242 = arith.addf %238, %241 : vector<8x128xf32>
    %243 = vector.extract_strided_slice %242 {offsets = [0, 0], sizes = [8, 32], strides = [1, 1]} : vector<8x128xf32> to vector<8x32xf32>
    %cst_98 = arith.constant 5.000000e-01 : f32
    %244 = vector.broadcast %cst_98 : f32 to vector<8x32xf32>
    %245 = arith.mulf %244, %243 : vector<8x32xf32>
    %246 = math.tanh %245 : vector<8x32xf32>
    %cst_99 = arith.constant 5.000000e-01 : f32
    %247 = vector.broadcast %cst_99 : f32 to vector<8x32xf32>
    %248 = arith.mulf %247, %246 : vector<8x32xf32>
    %cst_100 = arith.constant 5.000000e-01 : f32
    %249 = vector.broadcast %cst_100 : f32 to vector<8x32xf32>
    %250 = arith.addf %248, %249 : vector<8x32xf32>
    %251 = vector.extract_strided_slice %242 {offsets = [0, 32], sizes = [8, 32], strides = [1, 1]} : vector<8x128xf32> to vector<8x32xf32>
    %cst_101 = arith.constant 5.000000e-01 : f32
    %252 = vector.broadcast %cst_101 : f32 to vector<8x32xf32>
    %253 = arith.mulf %252, %251 : vector<8x32xf32>
    %254 = math.tanh %253 : vector<8x32xf32>
    %cst_102 = arith.constant 5.000000e-01 : f32
    %255 = vector.broadcast %cst_102 : f32 to vector<8x32xf32>
    %256 = arith.mulf %255, %254 : vector<8x32xf32>
    %cst_103 = arith.constant 5.000000e-01 : f32
    %257 = vector.broadcast %cst_103 : f32 to vector<8x32xf32>
    %258 = arith.addf %256, %257 : vector<8x32xf32>
    %259 = vector.extract_strided_slice %242 {offsets = [0, 64], sizes = [8, 32], strides = [1, 1]} : vector<8x128xf32> to vector<8x32xf32>
    %260 = math.tanh %259 : vector<8x32xf32>
    %261 = vector.extract_strided_slice %242 {offsets = [0, 96], sizes = [8, 32], strides = [1, 1]} : vector<8x128xf32> to vector<8x32xf32>
    %cst_104 = arith.constant 5.000000e-01 : f32
    %262 = vector.broadcast %cst_104 : f32 to vector<8x32xf32>
    %263 = arith.mulf %262, %261 : vector<8x32xf32>
    %264 = math.tanh %263 : vector<8x32xf32>
    %cst_105 = arith.constant 5.000000e-01 : f32
    %265 = vector.broadcast %cst_105 : f32 to vector<8x32xf32>
    %266 = arith.mulf %265, %264 : vector<8x32xf32>
    %cst_106 = arith.constant 5.000000e-01 : f32
    %267 = vector.broadcast %cst_106 : f32 to vector<8x32xf32>
    %268 = arith.addf %266, %267 : vector<8x32xf32>
    %269 = arith.mulf %258, %235 : vector<8x32xf32>
    %270 = arith.mulf %250, %260 : vector<8x32xf32>
    %271 = arith.addf %269, %270 : vector<8x32xf32>
    %272 = math.tanh %271 : vector<8x32xf32>
    %273 = arith.mulf %268, %272 : vector<8x32xf32>
    %c7_i32 = arith.constant 7 : i32
    %cst_107 = arith.constant dense<0.000000e+00> : vector<8x128xf32>
    %274 = tpu.matmul %273, %19, %cst_107 {dimension_numbers = #tpu.dot_dimension_numbers<[1], [0], [0], [1], [0, 0, 1, 1], [], []>} : vector<8x32xf32>, vector<32x128xf32>, vector<8x128xf32> -> vector<8x128xf32>
    %275 = arith.index_cast %c7_i32 : i32 to index
    %c0_108 = arith.constant 0 : index
    %c0_109 = arith.constant 0 : index
    %276 = vector.load %arg17[%275, %c0_108, %c0_109] : memref<8x8x128xf32, #tpu.memory_space<vmem>>, vector<1x8x128xf32>
    %277 = vector.shape_cast %276 : vector<1x8x128xf32> to vector<8x128xf32>
    %278 = arith.addf %274, %277 : vector<8x128xf32>
    %279 = vector.extract_strided_slice %278 {offsets = [0, 0], sizes = [8, 32], strides = [1, 1]} : vector<8x128xf32> to vector<8x32xf32>
    %cst_110 = arith.constant 5.000000e-01 : f32
    %280 = vector.broadcast %cst_110 : f32 to vector<8x32xf32>
    %281 = arith.mulf %280, %279 : vector<8x32xf32>
    %282 = math.tanh %281 : vector<8x32xf32>
    %cst_111 = arith.constant 5.000000e-01 : f32
    %283 = vector.broadcast %cst_111 : f32 to vector<8x32xf32>
    %284 = arith.mulf %283, %282 : vector<8x32xf32>
    %cst_112 = arith.constant 5.000000e-01 : f32
    %285 = vector.broadcast %cst_112 : f32 to vector<8x32xf32>
    %286 = arith.addf %284, %285 : vector<8x32xf32>
    %287 = vector.extract_strided_slice %278 {offsets = [0, 32], sizes = [8, 32], strides = [1, 1]} : vector<8x128xf32> to vector<8x32xf32>
    %cst_113 = arith.constant 5.000000e-01 : f32
    %288 = vector.broadcast %cst_113 : f32 to vector<8x32xf32>
    %289 = arith.mulf %288, %287 : vector<8x32xf32>
    %290 = math.tanh %289 : vector<8x32xf32>
    %cst_114 = arith.constant 5.000000e-01 : f32
    %291 = vector.broadcast %cst_114 : f32 to vector<8x32xf32>
    %292 = arith.mulf %291, %290 : vector<8x32xf32>
    %cst_115 = arith.constant 5.000000e-01 : f32
    %293 = vector.broadcast %cst_115 : f32 to vector<8x32xf32>
    %294 = arith.addf %292, %293 : vector<8x32xf32>
    %295 = vector.extract_strided_slice %278 {offsets = [0, 64], sizes = [8, 32], strides = [1, 1]} : vector<8x128xf32> to vector<8x32xf32>
    %296 = math.tanh %295 : vector<8x32xf32>
    %297 = vector.extract_strided_slice %278 {offsets = [0, 96], sizes = [8, 32], strides = [1, 1]} : vector<8x128xf32> to vector<8x32xf32>
    %cst_116 = arith.constant 5.000000e-01 : f32
    %298 = vector.broadcast %cst_116 : f32 to vector<8x32xf32>
    %299 = arith.mulf %298, %297 : vector<8x32xf32>
    %300 = math.tanh %299 : vector<8x32xf32>
    %cst_117 = arith.constant 5.000000e-01 : f32
    %301 = vector.broadcast %cst_117 : f32 to vector<8x32xf32>
    %302 = arith.mulf %301, %300 : vector<8x32xf32>
    %cst_118 = arith.constant 5.000000e-01 : f32
    %303 = vector.broadcast %cst_118 : f32 to vector<8x32xf32>
    %304 = arith.addf %302, %303 : vector<8x32xf32>
    %305 = arith.mulf %294, %271 : vector<8x32xf32>
    %306 = arith.mulf %286, %296 : vector<8x32xf32>
    %307 = arith.addf %305, %306 : vector<8x32xf32>
    %308 = math.tanh %307 : vector<8x32xf32>
    %309 = arith.mulf %304, %308 : vector<8x32xf32>
    %c8_i32 = arith.constant 8 : i32
    %c0_119 = arith.constant 0 : index
    %c0_120 = arith.constant 0 : index
    %310 = vector.load %arg18[%c0_119, %c0_120] : memref<8x32xf32, #tpu.memory_space<vmem>>, vector<8x32xf32>
    tpu.vector_store %arg18[%c0_119, %c0_120], %309 {strides = array<i32>} : memref<8x32xf32, #tpu.memory_space<vmem>>, vector<8x32xf32>,
    %c0_121 = arith.constant 0 : index
    %c0_122 = arith.constant 0 : index
    %311 = vector.load %arg19[%c0_121, %c0_122] : memref<8x32xf32, #tpu.memory_space<vmem>>, vector<8x32xf32>
    tpu.vector_store %arg19[%c0_121, %c0_122], %307 {strides = array<i32>} : memref<8x32xf32, #tpu.memory_space<vmem>>, vector<8x32xf32>,
    %c0_i32_123 = arith.constant 0 : i32
    %312 = arith.cmpi eq, %arg1, %c0_i32_123 : i32
    %313 = arith.extui %312 : i1 to i32
    %c0_i32_124 = arith.constant 0 : i32
    %314 = arith.cmpi ne, %313, %c0_i32_124 : i32
    scf.if %314 {
      %c0_125 = arith.constant 0 : index
      %c0_126 = arith.constant 0 : index
      %315 = vector.load %arg18[%c0_125, %c0_126] : memref<8x32xf32, #tpu.memory_space<vmem>>, vector<8x32xf32>
      %c0_127 = arith.constant 0 : index
      %c0_128 = arith.constant 0 : index
      %316 = vector.load %arg9[%c0_127, %c0_128] : memref<32x16xf32, #tpu.memory_space<vmem>>, vector<32x16xf32>
      %cst_129 = arith.constant dense<0.000000e+00> : vector<8x16xf32>
      %317 = tpu.matmul %315, %316, %cst_129 {dimension_numbers = #tpu.dot_dimension_numbers<[1], [0], [0], [1], [0, 0, 1, 1], [], []>} : vector<8x32xf32>, vector<32x16xf32>, vector<8x16xf32> -> vector<8x16xf32>
      %c0_130 = arith.constant 0 : index
      %c0_131 = arith.constant 0 : index
      %318 = vector.load %arg10[%c0_130, %c0_131] : memref<1x16xf32, #tpu.memory_space<vmem>>, vector<1x16xf32>
      %319 = vector.broadcast %318 : vector<1x16xf32> to vector<8x16xf32>
      %320 = arith.addf %317, %319 : vector<8x16xf32>
      %cst_132 = arith.constant 0.000000e+00 : f32
      %321 = vector.broadcast %cst_132 : f32 to vector<8x16xf32>
      %322 = arith.maximumf %320, %321 : vector<8x16xf32>
      %c0_133 = arith.constant 0 : index
      %c0_134 = arith.constant 0 : index
      %323 = vector.load %arg11[%c0_133, %c0_134] : memref<16x32xf32, #tpu.memory_space<vmem>>, vector<16x32xf32>
      %cst_135 = arith.constant dense<0.000000e+00> : vector<8x32xf32>
      %324 = tpu.matmul %322, %323, %cst_135 {dimension_numbers = #tpu.dot_dimension_numbers<[1], [0], [0], [1], [0, 0, 1, 1], [], []>} : vector<8x16xf32>, vector<16x32xf32>, vector<8x32xf32> -> vector<8x32xf32>
      %c0_136 = arith.constant 0 : index
      %c0_137 = arith.constant 0 : index
      %325 = vector.load %arg3[%c0_136, %c0_137] : memref<8x11xf32, #tpu.memory_space<vmem>>, vector<8x11xf32>
      %c0_138 = arith.constant 0 : index
      %c0_139 = arith.constant 0 : index
      %326 = vector.load %arg12[%c0_138, %c0_139] : memref<11x32xf32, #tpu.memory_space<vmem>>, vector<11x32xf32>
      %cst_140 = arith.constant dense<0.000000e+00> : vector<8x32xf32>
      %327 = tpu.matmul %325, %326, %cst_140 {dimension_numbers = #tpu.dot_dimension_numbers<[1], [0], [0], [1], [0, 0, 1, 1], [], []>} : vector<8x11xf32>, vector<11x32xf32>, vector<8x32xf32> -> vector<8x32xf32>
      %328 = arith.addf %324, %327 : vector<8x32xf32>
      %c0_141 = arith.constant 0 : index
      %c0_142 = arith.constant 0 : index
      %329 = vector.load %arg13[%c0_141, %c0_142] : memref<1x32xf32, #tpu.memory_space<vmem>>, vector<1x32xf32>
      %330 = vector.broadcast %329 : vector<1x32xf32> to vector<8x32xf32>
      %331 = arith.addf %328, %330 : vector<8x32xf32>
      %cst_143 = arith.constant 0.000000e+00 : f32
      %332 = vector.broadcast %cst_143 : f32 to vector<8x32xf32>
      %333 = arith.maximumf %331, %332 : vector<8x32xf32>
      %c0_144 = arith.constant 0 : index
      %c0_145 = arith.constant 0 : index
      %334 = vector.load %arg14[%c0_144, %c0_145] : memref<32x1xf32, #tpu.memory_space<vmem>>, vector<32x1xf32>
      %cst_146 = arith.constant dense<0.000000e+00> : vector<8x1xf32>
      %335 = tpu.matmul %333, %334, %cst_146 {dimension_numbers = #tpu.dot_dimension_numbers<[1], [0], [0], [1], [0, 0, 1, 1], [], []>} : vector<8x32xf32>, vector<32x1xf32>, vector<8x1xf32> -> vector<8x1xf32>
      %c0_147 = arith.constant 0 : index
      %c0_148 = arith.constant 0 : index
      %336 = vector.load %arg15[%c0_147, %c0_148] : memref<1x1xf32, #tpu.memory_space<vmem>>, vector<1x1xf32>
      %337 = vector.broadcast %336 : vector<1x1xf32> to vector<8x1xf32>
      %338 = arith.addf %335, %337 : vector<8x1xf32>
      %c0_149 = arith.constant 0 : index
      %c0_150 = arith.constant 0 : index
      %339 = vector.load %arg16[%c0_149, %c0_150] : memref<8x1xf32, #tpu.memory_space<vmem>>, vector<8x1xf32>
      tpu.vector_store %arg16[%c0_149, %c0_150], %338 {strides = array<i32>} : memref<8x1xf32, #tpu.memory_space<vmem>>, vector<8x1xf32>,
    } else {
    }
    return
  }
  func.func @transform_0(%arg0: i32, %arg1: i32) -> (i32, i32, i32) {
    %c0_i32 = arith.constant 0 : i32
    %c0_i32_0 = arith.constant 0 : i32
    return %arg1, %arg0, %c0_i32 : i32, i32, i32
  }
  func.func @transform_1(%arg0: i32, %arg1: i32) -> (i32, i32) {
    %c0_i32 = arith.constant 0 : i32
    %c0_i32_0 = arith.constant 0 : i32
    return %arg0, %c0_i32 : i32, i32
  }
  func.func @transform_2(%arg0: i32, %arg1: i32) -> (i32, i32) {
    %c0_i32 = arith.constant 0 : i32
    %c0_i32_0 = arith.constant 0 : i32
    %c0_i32_1 = arith.constant 0 : i32
    return %c0_i32, %c0_i32_0 : i32, i32
  }
  func.func @transform_3(%arg0: i32, %arg1: i32) -> (i32, i32) {
    %c0_i32 = arith.constant 0 : i32
    %c0_i32_0 = arith.constant 0 : i32
    %c0_i32_1 = arith.constant 0 : i32
    return %c0_i32, %c0_i32_0 : i32, i32
  }
  func.func @transform_4(%arg0: i32, %arg1: i32) -> (i32, i32) {
    %c0_i32 = arith.constant 0 : i32
    %c0_i32_0 = arith.constant 0 : i32
    %c0_i32_1 = arith.constant 0 : i32
    return %c0_i32, %c0_i32_0 : i32, i32
  }
  func.func @transform_5(%arg0: i32, %arg1: i32) -> (i32, i32) {
    %c0_i32 = arith.constant 0 : i32
    %c0_i32_0 = arith.constant 0 : i32
    %c0_i32_1 = arith.constant 0 : i32
    return %c0_i32, %c0_i32_0 : i32, i32
  }
  func.func @transform_6(%arg0: i32, %arg1: i32) -> (i32, i32) {
    %c0_i32 = arith.constant 0 : i32
    %c0_i32_0 = arith.constant 0 : i32
    %c0_i32_1 = arith.constant 0 : i32
    return %c0_i32, %c0_i32_0 : i32, i32
  }
  func.func @transform_7(%arg0: i32, %arg1: i32) -> (i32, i32) {
    %c0_i32 = arith.constant 0 : i32
    %c0_i32_0 = arith.constant 0 : i32
    %c0_i32_1 = arith.constant 0 : i32
    return %c0_i32, %c0_i32_0 : i32, i32
  }
  func.func @transform_8(%arg0: i32, %arg1: i32) -> (i32, i32) {
    %c0_i32 = arith.constant 0 : i32
    %c0_i32_0 = arith.constant 0 : i32
    %c0_i32_1 = arith.constant 0 : i32
    return %c0_i32, %c0_i32_0 : i32, i32
  }
  func.func @transform_9(%arg0: i32, %arg1: i32) -> (i32, i32) {
    %c0_i32 = arith.constant 0 : i32
    %c0_i32_0 = arith.constant 0 : i32
    %c0_i32_1 = arith.constant 0 : i32
    return %c0_i32, %c0_i32_0 : i32, i32
  }
  func.func @transform_10(%arg0: i32, %arg1: i32) -> (i32, i32) {
    %c0_i32 = arith.constant 0 : i32
    %c0_i32_0 = arith.constant 0 : i32
    %c0_i32_1 = arith.constant 0 : i32
    return %c0_i32, %c0_i32_0 : i32, i32
  }
  func.func @transform_11(%arg0: i32, %arg1: i32) -> (i32, i32) {
    %c0_i32 = arith.constant 0 : i32
    %c0_i32_0 = arith.constant 0 : i32
    %c0_i32_1 = arith.constant 0 : i32
    return %c0_i32, %c0_i32_0 : i32, i32
  }
  func.func @transform_12(%arg0: i32, %arg1: i32) -> (i32, i32) {
    %c0_i32 = arith.constant 0 : i32
    %c0_i32_0 = arith.constant 0 : i32
    %c0_i32_1 = arith.constant 0 : i32
    return %c0_i32, %c0_i32_0 : i32, i32
  }
  func.func @transform_13(%arg0: i32, %arg1: i32) -> (i32, i32) {
    %c0_i32 = arith.constant 0 : i32
    %c0_i32_0 = arith.constant 0 : i32
    %c0_i32_1 = arith.constant 0 : i32
    return %c0_i32, %c0_i32_0 : i32, i32
  }
  func.func @transform_14(%arg0: i32, %arg1: i32) -> (i32, i32) {
    %c0_i32 = arith.constant 0 : i32
    %c0_i32_0 = arith.constant 0 : i32
    return %arg0, %c0_i32 : i32, i32
  }
}

</mosaic_0001>

<bundles_post_ra>
// kernel: sta_paras_lstm_mlp.1
= control target key start
LH: loop header
LB: loop body
LE: loop exit
PB: predicated region body
PF: predicated region fallthrough
CT: control target
= control target key end

     0   :  { %vm94_vm0 = vcmask 1044480   ;;  %vm69_vm1 = vcmask 39936   ;;  %vm53_vm2 = vcmask 261120   ;;  %v865_v28 = vmov 0.0   ;;  %s866_s29 = smov 64   ;;  %s867_s30 = smov 32   ;;  %s1168_s2 = inlined_call_operand.vmem [shape: f32[5,32], index: 2, kind: input, shape index: {}]   ;;  %s1169_s0 = inlined_call_operand.vmem [shape: f32[8,8,5], index: 0, kind: input, shape index: {}]   ;;  %s1170_s3 = inlined_call_operand.vmem [shape: f32[1,32], index: 3, kind: input, shape index: {}]   ;;  %s1171_s4 = inlined_call_operand.vmem [shape: f32[32,128], index: 4, kind: input, shape index: {}]   ;;  %s1172_s5 = inlined_call_operand.vmem [shape: f32[1,128], index: 5, kind: input, shape index: {}]   ;;  %s1173_s6 = inlined_call_operand.vmem [shape: f32[32,128], index: 6, kind: input, shape index: {}]   ;;  %s1174_s8 = inlined_call_operand.vmem [shape: f32[1,16], index: 8, kind: input, shape index: {}]   ;;  %s1175_s7 = inlined_call_operand.vmem [shape: f32[32,16], index: 7, kind: input, shape index: {}]   ;;  %s1176_s10 = inlined_call_operand.vmem [shape: f32[11,32], index: 10, kind: input, shape index: {}]   ;;  %s1177_s9 = inlined_call_operand.vmem [shape: f32[16,32], index: 9, kind: input, shape index: {}]   ;;  %s1178_s1 = inlined_call_operand.vmem [shape: f32[8,11], index: 1, kind: input, shape index: {}]   ;;  %s1179_s12 = inlined_call_operand.vmem [shape: f32[32,1], index: 12, kind: input, shape index: {}]   ;;  %s1180_s11 = inlined_call_operand.vmem [shape: f32[1,32], index: 11, kind: input, shape index: {}]   ;;  %s1181_s13 = inlined_call_operand.<no memory space> [shape: f32[1,1], index: 13, kind: input, shape index: {}]   ;;  %s1182_s14 = inlined_call_operand.vmem [shape: f32[8,1], index: 14, kind: output, shape index: {}]  }
   0x1   :  { %v64_v0 = vld [vmem:[%s1168_s2] sm:$0x1f]  ;;  %v57_v2 = vld [vmem:[%s1169_s0 + $0x8] sm:$0xff]  ;;  %v58_v3 = vld [vmem:[%s1169_s0 + $0x10] sm:$0xff]  ;;  %54 = vst.msk [vmem:[#allocation3] sm:$0xff] %vm53_vm2, %v865_v28  ;;  %vm683_vm3 = vcmask 1042432  }
   0x2   :  { %v56_v1 = vld [vmem:[%s1169_s0] sm:$0xff]  ;;  %774 = vmatpush.msk.msra.mxu0 %vm94_vm0, %v64_v0  ;;  %v59_v4 = vld [vmem:[%s1169_s0 + $0x18] sm:$0xff]  ;;  %v61_v7 = vld [vmem:[%s1169_s0 + $0x28] sm:$0xff]  ;;  %55 = vst.msk [vmem:[#allocation4] sm:$0xff] %vm53_vm2, %v865_v28  ;;  %vm679_vm4 = vcmask 89088   ;;  %vm707_vm5 = vcmask 130048  }
   0x3   :  { %775 = vmatmul.msk.f32.vlgmr.msra.gmra.mxu0 %vm69_vm1, %v56_v1  ;;  %v150_v5 = vld [vmem:[%s1171_s4 + $0x18] sm:$0xff]  ;;  %v60_v6 = vld [vmem:[%s1169_s0 + $0x20] sm:$0xff]  ;;  %v62_v8 = vld [vmem:[%s1169_s0 + $0x30] sm:$0xff]  ;;  %vm768_vm6 = vcmask 7168  }
   0x4   :  { %192 = vmatpush.msra.mxu1 %v150_v5  ;;  %804 = vmatpush.msra.mxu2 %v150_v5  ;;  %v63_v9 = vld [vmem:[%s1169_s0 + $0x38] sm:$0xff]  ;;  %v149_v10 = vld [vmem:[%s1171_s4 + $0x10] sm:$0xff]  ;;  %v148_v11 = vld [vmem:[%s1171_s4 + $0x8] sm:$0xff] }
   0x5   :  { %v147_v12 = vld [vmem:[%s1171_s4] sm:$0xff]  ;;  %v1001_v26 = vld [vmem:[%s1173_s6 + $0x18] sm:$0xff]  ;;  %v1006_v27 = vld [vmem:[%s1173_s6 + $0x10] sm:$0xff] }
   0x6   :  { %193 = vmatpush.msra.mxu1 %v149_v10  ;;  %805 = vmatpush.msra.mxu2 %v149_v10  ;;  %v812_v13 = vld [vmem:[%s1170_s3] ss:$0 sm:$0xff]  ;;  %v1015_v29 = vld [vmem:[%s1173_s6 + $0x8] sm:$0xff] }
   0x7   :  { %304 = vmatpush.msra.mxu3 %v1001_v26  ;;  %v1022_v32 = vld [vmem:[%s1173_s6] sm:$0xff] }
   0x8   :  { %194 = vmatpush.msra.mxu1 %v148_v11  ;;  %806 = vmatpush.msra.mxu2 %v148_v11  ;;  %v233_v43 = vld [vmem:[#allocation3] sm:$0xff] }
   0x9   :  { %305 = vmatpush.msra.mxu3 %v1006_v27  ;;  %v1048_v44 = vld [vmem:[%s1172_s5] ss:$0 sm:$0xff]  ;;  %v234_v52 = vld [vmem:[#allocation4] sm:$0xff]  ;;  %s868_s5 = smov 96  }
   0xa   :  { %195 = vmatpush.msra.mxu1 %v147_v12  ;;  %807 = vmatpush.msra.mxu2 %v147_v12 }
   0xb   :  { %776 = vmatmul.msk.f32.gmra.mxu0 %vm69_vm1, %v57_v2  ;;  %306 = vmatpush.msra.mxu3 %v1015_v29 }
   0xc   :  { %251 = vmatpush.msrb.mxu2 %v1001_v26 }
   0xd   :  { %307 = vmatpush.msra.mxu3 %v1022_v32 }
   0xe   :  { %252 = vmatpush.msrb.mxu2 %v1006_v27 }
   0xf   :  { %402 = vmatpush.msrb.mxu3 %v1001_v26 }
  0x10   :  { %253 = vmatpush.msrb.mxu2 %v1015_v29 }
  0x11   :  { %403 = vmatpush.msrb.mxu3 %v1006_v27 }
  0x12   :  { %254 = vmatpush.msrb.mxu2 %v1022_v32 }
  0x13   :  { %777 = vmatmul.msk.f32.gmra.mxu0 %vm69_vm1, %v58_v3  ;;  %404 = vmatpush.msrb.mxu3 %v1015_v29 }
  0x15   :  { %405 = vmatpush.msrb.mxu3 %v1022_v32 }
  0x1b   :  { %778 = vmatmul.msk.f32.gmra.mxu0 %vm69_vm1, %v59_v4 }
  0x23   :  { %779 = vmatmul.msk.f32.gmra.mxu0 %vm69_vm1, %v60_v6 }
  0x2b   :  { %780 = vmatmul.msk.f32.gmra.mxu0 %vm69_vm1, %v61_v7 }
  0x33   :  { %781 = vmatmul.msk.f32.gmra.mxu0 %vm69_vm1, %v62_v8 }
  0x3b   :  { %782 = vmatmul.msk.f32.gmra.mxu0 %vm69_vm1, %v63_v9 }
  0x80   :  { %v115_v14 = vpop.f32.mrf.mxu0 }
  0x81   :  { %v116_v15 = vadd.f32 %v812_v13, %v115_v14 }
  0x83   :  { %v139_v16 = vmax.f32 %v116_v15, 0.0 }
  0x85   :  { %783 = vmatmul.msk.f32.vlgmr.msra.gmra.mxu1 %vm53_vm2, %v139_v16 }
  0x88   :  { %v118_v17 = vpop.f32.mrf.mxu0 }
  0x89   :  { %v119_v18 = vadd.f32 %v812_v13, %v118_v17 }
  0x8b   :  { %v140_v19 = vmax.f32 %v119_v18, 0.0 }
  0x8d   :  { %784 = vmatmul.msk.f32.gmra.mxu1 %vm53_vm2, %v140_v19 }
  0x90   :  { %v121_v20 = vpop.f32.mrf.mxu0 }
  0x91   :  { %v122_v21 = vadd.f32 %v812_v13, %v121_v20 }
  0x93   :  { %v141_v22 = vmax.f32 %v122_v21, 0.0 }
  0x95   :  { %785 = vmatmul.msk.f32.gmra.mxu1 %vm53_vm2, %v141_v22 }
  0x98   :  { %v124_v23 = vpop.f32.mrf.mxu0 }
  0x99   :  { %v125_v24 = vadd.f32 %v812_v13, %v124_v23 }
  0x9b   :  { %v142_v25 = vmax.f32 %v125_v24, 0.0 }
  0x9d   :  { %786 = vmatmul.msk.f32.gmra.mxu1 %vm53_vm2, %v142_v25 }
  0xa0   :  { %v127_v30 = vpop.f32.mrf.mxu0 }
  0xa1   :  { %v128_v31 = vadd.f32 %v812_v13, %v127_v30 }
  0xa3   :  { %v143_v33 = vmax.f32 %v128_v31, 0.0 }
  0xa5   :  { %787 = vmatmul.msk.f32.gmra.mxu1 %vm53_vm2, %v143_v33 }
  0xa8   :  { %v130_v34 = vpop.f32.mrf.mxu0 }
  0xa9   :  { %v131_v35 = vadd.f32 %v812_v13, %v130_v34 }
  0xab   :  { %v144_v36 = vmax.f32 %v131_v35, 0.0 }
  0xad   :  { %788 = vmatmul.msk.f32.gmra.mxu1 %vm53_vm2, %v144_v36 }
  0xb0   :  { %v133_v37 = vpop.f32.mrf.mxu0 }
  0xb1   :  { %v134_v38 = vadd.f32 %v812_v13, %v133_v37 }
  0xb3   :  { %v145_v39 = vmax.f32 %v134_v38, 0.0 }
  0xb5   :  { %789 = vmatmul.msk.f32.gmra.mxu1 %vm53_vm2, %v145_v39 }
  0xb8   :  { %v136_v40 = vpop.f32.mrf.mxu0 }
  0xb9   :  { %v137_v41 = vadd.f32 %v812_v13, %v136_v40 }
  0xbb   :  { %v146_v42 = vmax.f32 %v137_v41, 0.0 }
  0xbd   :  { %790 = vmatmul.msk.f32.vlgmr.msra.gmra.mxu2 %vm53_vm2, %v146_v42 }
  0xbe   :  { %353 = vmatpush.msra.mxu2 %v1001_v26 }
  0xc0   :  { %354 = vmatpush.msra.mxu2 %v1006_v27 }
  0xc2   :  { %355 = vmatpush.msra.mxu2 %v1015_v29 }
  0xc4   :  { %356 = vmatpush.msra.mxu2 %v1022_v32 }
  0xc5   :  { %791 = vmatmul.msk.f32.vlgmr.msrb.gmra.mxu2 %vm53_vm2, %v233_v43 }
  0xc6   :  { %451 = vmatpush.msrb.mxu2 %v1001_v26 }
  0xc8   :  { %452 = vmatpush.msrb.mxu2 %v1006_v27 }
  0xca   :  { %453 = vmatpush.msrb.mxu2 %v1015_v29 }
  0xcc   :  { %454 = vmatpush.msrb.mxu2 %v1022_v32 }
 0x102   :  { %v197_v47 = vpop.f32.mrf.mxu1 }
 0x103   :  { %v198_v48 = vadd.f32 %v1048_v44, %v197_v47 }
 0x10a   :  { %v200_v3 = vpop.f32.mrf.mxu1 }
 0x10b   :  { %v201_v4 = vadd.f32 %v1048_v44, %v200_v3 }
 0x112   :  { %v203_v21 = vpop.f32.mrf.mxu1 }
 0x113   :  { %v204_v22 = vadd.f32 %v1048_v44, %v203_v21 }
 0x11a   :  { %v206_v43 = vpop.f32.mrf.mxu1 }
 0x140   :  { %v218_v45 = vpop.f32.mrf.mxu2 }
 0x141   :  { %v1051_v46 = vadd.f32 %v1048_v44, %v218_v45  ;;  %v207_v45 = vadd.f32 %v1048_v44, %v206_v43 }
 0x148   :  { %v256_v49 = vpop.f32.mrf.mxu2 }
 0x149   :  { %v257_v50 = vadd.f32 %v256_v49, %v198_v48 }
 0x14b   :  { %817 = vtanh.f32 %v257_v50  ;;  %v259_v53 = vmul.f32 0.5, %v257_v50 }
 0x14d   :  { %819 = vtanh.f32 %v259_v53 }
 0x151   :  { %v818_v51 = vpop.eup %817 }
 0x152   :  { %270 = vrot.lane.b32.xlu0 %v818_v51, %s866_s29 }
 0x153   :  { %v820_v54 = vpop.eup %819 }
 0x154   :  { %v261_v55 = vmul.f32 0.5, %v820_v54 }
 0x156   :  { %v262_v56 = vadd.f32 0.5, %v261_v55 }
 0x15a   :  { %265 = vrot.lane.b32.xlu0 %v234_v52, %s867_s30 }
 0x1c4   :  { %v271_v57 = vpop.permute.xlu0 %270 }
 0x1c5   :  { %v273_v58 = vmul.f32 %v271_v57, %v262_v56 }
 0x1c7   :  { %275 = vrot.lane.b32.xlu1 %v273_v58, %s867_s30 }
 0x1cc   :  { %v266_v59 = vpop.permute.xlu0 %265 }
 0x1cd   :  { %v268_v60 = vmul.f32 %v266_v59, %v262_v56  ;;  %v209_v59 = vpop.f32.mrf.mxu1 }
 0x239   :  { %v276_v61 = vpop.permute.xlu1 %275 }
 0x23a   :  { %v278_v62 = vadd.f32 %v276_v61, %v268_v60  ;;  %v210_v60 = vadd.f32 %v1048_v44, %v209_v59 }
 0x23c   :  { %821 = vtanh.f32 %v278_v62 }
 0x242   :  { %v822_v63 = vpop.eup %821 }
 0x243   :  { %281 = vrot.lane.b32.xlu1 %v822_v63, %s866_s29 }
 0x2b5   :  { %v282_v0 = vpop.permute.xlu1 %281 }
 0x2b6   :  { %v284_v1 = vmul.f32 %v282_v0, %v262_v56 }
 0x2b8   :  { %288 = vrot.lane.b32.xlu2 %v284_v1, %s867_s30 }
 0x312   :  { %v289_v2 = vpop.permute.xlu2 %288 }
 0x313   :  { %792 = vmatmul.msk.f32.vlgmr.msra.gmra.mxu3 %vm53_vm2, %v289_v2 }
 0x314   :  { %500 = vmatpush.msra.mxu3 %v1001_v26 }
 0x316   :  { %501 = vmatpush.msra.mxu3 %v1006_v27 }
 0x318   :  { %502 = vmatpush.msra.mxu3 %v1015_v29 }
 0x31a   :  { %503 = vmatpush.msra.mxu3 %v1022_v32 }
 0x396   :  { %v309_v5 = vpop.f32.mrf.mxu3 }
 0x397   :  { %v310_v6 = vadd.f32 %v309_v5, %v201_v4 }
 0x399   :  { %823 = vtanh.f32 %v310_v6  ;;  %v312_v8 = vmul.f32 0.5, %v310_v6 }
 0x39b   :  { %825 = vtanh.f32 %v312_v8 }
 0x39f   :  { %v824_v7 = vpop.eup %823 }
 0x3a0   :  { %319 = vrot.lane.b32.xlu2 %v824_v7, %s866_s29 }
 0x3a1   :  { %v826_v9 = vpop.eup %825 }
 0x3a2   :  { %v314_v10 = vmul.f32 0.5, %v826_v9 }
 0x3a4   :  { %v315_v11 = vadd.f32 0.5, %v314_v10 }
 0x3a6   :  { %v317_v14 = vmul.f32 %v315_v11, %v278_v62 }
 0x3fa   :  { %v320_v12 = vpop.permute.xlu2 %319 }
 0x3fb   :  { %v322_v13 = vmul.f32 %v320_v12, %v315_v11 }
 0x3fd   :  { %324 = vrot.lane.b32.xlu0 %v322_v13, %s867_s30  ;;  %v212_v13 = vpop.f32.mrf.mxu1 }
 0x46f   :  { %v325_v15 = vpop.permute.xlu0 %324 }
 0x470   :  { %v327_v16 = vadd.f32 %v325_v15, %v317_v14  ;;  %v213_v14 = vadd.f32 %v1048_v44, %v212_v13  ;;  %v814_v13 = vld [vmem:[%s1174_s8] ss:$0 sm:$0xff] }
 0x472   :  { %827 = vtanh.f32 %v327_v16 }
 0x478   :  { %v828_v17 = vpop.eup %827 }
 0x479   :  { %330 = vrot.lane.b32.xlu1 %v828_v17, %s866_s29 }
 0x4eb   :  { %v331_v18 = vpop.permute.xlu1 %330 }
 0x4ec   :  { %v333_v19 = vmul.f32 %v331_v18, %v315_v11 }
 0x4ee   :  { %337 = vrot.lane.b32.xlu2 %v333_v19, %s867_s30 }
 0x548   :  { %v338_v20 = vpop.permute.xlu2 %337 }
 0x549   :  { %793 = vmatmul.msk.f32.vlgmr.msra.gmra.mxu2 %vm53_vm2, %v338_v20 }
 0x54a   :  { %549 = vmatpush.msra.mxu2 %v1001_v26 }
 0x54c   :  { %550 = vmatpush.msra.mxu2 %v1006_v27 }
 0x54e   :  { %551 = vmatpush.msra.mxu2 %v1015_v29 }
 0x550   :  { %552 = vmatpush.msra.mxu2 %v1022_v32 }
 0x5cc   :  { %v358_v23 = vpop.f32.mrf.mxu2 }
 0x5cd   :  { %v359_v24 = vadd.f32 %v358_v23, %v204_v22 }
 0x5cf   :  { %829 = vtanh.f32 %v359_v24  ;;  %v361_v28 = vmul.f32 0.5, %v359_v24 }
 0x5d1   :  { %831 = vtanh.f32 %v361_v28 }
 0x5d5   :  { %v830_v25 = vpop.eup %829 }
 0x5d6   :  { %368 = vrot.lane.b32.xlu0 %v830_v25, %s866_s29 }
 0x5d7   :  { %v832_v30 = vpop.eup %831 }
 0x5d8   :  { %v363_v31 = vmul.f32 0.5, %v832_v30 }
 0x5da   :  { %v364_v33 = vadd.f32 0.5, %v363_v31 }
 0x5dc   :  { %v366_v36 = vmul.f32 %v364_v33, %v327_v16 }
 0x648   :  { %v369_v34 = vpop.permute.xlu0 %368 }
 0x649   :  { %v371_v35 = vmul.f32 %v369_v34, %v364_v33 }
 0x64b   :  { %373 = vrot.lane.b32.xlu1 %v371_v35, %s867_s30  ;;  %v215_v35 = vpop.f32.mrf.mxu1 }
 0x6bd   :  { %v374_v37 = vpop.permute.xlu1 %373 }
 0x6be   :  { %v376_v38 = vadd.f32 %v374_v37, %v366_v36  ;;  %v216_v36 = vadd.f32 %v1048_v44, %v215_v35 }
 0x6c0   :  { %833 = vtanh.f32 %v376_v38 }
 0x6c6   :  { %v834_v39 = vpop.eup %833 }
 0x6c7   :  { %379 = vrot.lane.b32.xlu2 %v834_v39, %s866_s29 }
 0x721   :  { %v380_v40 = vpop.permute.xlu2 %379 }
 0x722   :  { %v382_v41 = vmul.f32 %v380_v40, %v364_v33 }
 0x724   :  { %386 = vrot.lane.b32.xlu0 %v382_v41, %s867_s30 }
 0x796   :  { %v387_v42 = vpop.permute.xlu0 %386 }
 0x797   :  { %794 = vmatmul.msk.f32.vlgmr.msrb.gmra.mxu3 %vm53_vm2, %v387_v42 }
 0x798   :  { %598 = vmatpush.msrb.mxu3 %v1001_v26 }
 0x79a   :  { %599 = vmatpush.msrb.mxu3 %v1006_v27 }
 0x79c   :  { %600 = vmatpush.msrb.mxu3 %v1015_v29 }
 0x79e   :  { %601 = vmatpush.msrb.mxu3 %v1022_v32 }
 0x81a   :  { %v407_v47 = vpop.f32.mrf.mxu3 }
 0x81b   :  { %v408_v48 = vadd.f32 %v407_v47, %v207_v45 }
 0x81d   :  { %835 = vtanh.f32 %v408_v48  ;;  %v410_v50 = vmul.f32 0.5, %v408_v48 }
 0x81f   :  { %837 = vtanh.f32 %v410_v50 }
 0x823   :  { %v836_v49 = vpop.eup %835 }
 0x824   :  { %417 = vrot.lane.b32.xlu1 %v836_v49, %s866_s29 }
 0x825   :  { %v838_v51 = vpop.eup %837 }
 0x826   :  { %v412_v52 = vmul.f32 0.5, %v838_v51 }
 0x828   :  { %v413_v26 = vadd.f32 0.5, %v412_v52 }
 0x82a   :  { %v415_v29 = vmul.f32 %v413_v26, %v376_v38 }
 0x896   :  { %v418_v53 = vpop.permute.xlu1 %417 }
 0x897   :  { %v420_v27 = vmul.f32 %v418_v53, %v413_v26 }
 0x899   :  { %422 = vrot.lane.b32.xlu2 %v420_v27, %s867_s30 }
 0x8f3   :  { %v423_v32 = vpop.permute.xlu2 %422 }
 0x8f4   :  { %v425_v54 = vadd.f32 %v423_v32, %v415_v29 }
 0x8f6   :  { %839 = vtanh.f32 %v425_v54 }
 0x8fc   :  { %v840_v55 = vpop.eup %839 }
 0x8fd   :  { %428 = vrot.lane.b32.xlu0 %v840_v55, %s866_s29 }
 0x96f   :  { %v429_v56 = vpop.permute.xlu0 %428 }
 0x970   :  { %v431_v57 = vmul.f32 %v429_v56, %v413_v26 }
 0x972   :  { %435 = vrot.lane.b32.xlu1 %v431_v57, %s867_s30 }
 0x9e4   :  { %v436_v58 = vpop.permute.xlu1 %435 }
 0x9e5   :  { %795 = vmatmul.msk.f32.vlgmr.msrb.gmra.mxu2 %vm53_vm2, %v436_v58 }
 0xa68   :  { %v456_v61 = vpop.f32.mrf.mxu2 }
 0xa69   :  { %v457_v62 = vadd.f32 %v456_v61, %v210_v60 }
 0xa6b   :  { %841 = vtanh.f32 %v457_v62  ;;  %v459_v0 = vmul.f32 0.5, %v457_v62 }
 0xa6d   :  { %843 = vtanh.f32 %v459_v0 }
 0xa71   :  { %v842_v63 = vpop.eup %841 }
 0xa72   :  { %466 = vrot.lane.b32.xlu2 %v842_v63, %s866_s29 }
 0xa73   :  { %v844_v1 = vpop.eup %843 }
 0xa74   :  { %v461_v2 = vmul.f32 0.5, %v844_v1  ;;  %v645_v1 = vld [vmem:[%s1175_s7 + $0x18] sm:$0xff] }
 0xa75   :  { %665 = vmatpush.msrb.mxu2 %v645_v1 }
 0xa76   :  { %v462_v3 = vadd.f32 0.5, %v461_v2  ;;  %v644_v2 = vld [vmem:[%s1175_s7 + $0x10] sm:$0xff] }
 0xa77   :  { %666 = vmatpush.msrb.mxu2 %v644_v2 }
 0xa78   :  { %v464_v6 = vmul.f32 %v462_v3, %v425_v54 }
 0xacc   :  { %v467_v4 = vpop.permute.xlu2 %466 }
 0xacd   :  { %v469_v5 = vmul.f32 %v467_v4, %v462_v3  ;;  %v642_v4 = vld [vmem:[%s1175_s7] sm:$0xff] }
 0xacf   :  { %471 = vrot.lane.b32.xlu0 %v469_v5, %s867_s30  ;;  %v678_v5 = vld [vmem:[%s1176_s10 + $0x8] sm:$0x7] }
 0xb41   :  { %v472_v7 = vpop.permute.xlu0 %471 }
 0xb42   :  { %v474_v8 = vadd.f32 %v472_v7, %v464_v6  ;;  %v675_v6 = vld [vmem:[%s1177_s9 + $0x8] sm:$0xff] }
 0xb44   :  { %845 = vtanh.f32 %v474_v8 }
 0xb4a   :  { %v846_v9 = vpop.eup %845 }
 0xb4b   :  { %477 = vrot.lane.b32.xlu1 %v846_v9, %s866_s29  ;;  %v677_v9 = vld [vmem:[%s1176_s10] sm:$0xff] }
 0xbbd   :  { %v478_v10 = vpop.permute.xlu1 %477 }
 0xbbe   :  { %v480_v11 = vmul.f32 %v478_v10, %v462_v3  ;;  %v643_v3 = vld [vmem:[%s1175_s7 + $0x8] sm:$0xff]  ;;  %v674_v10 = vld [vmem:[%s1177_s9] sm:$0xff] }
 0xbbf   :  { %667 = vmatpush.msrb.mxu2 %v643_v3 }
 0xbc0   :  { %484 = vrot.lane.b32.xlu2 %v480_v11, %s867_s30  ;;  %v676_v11 = vld [vmem:[%s1178_s1] sm:$0xff] }
 0xbc1   :  { %668 = vmatpush.msrb.mxu2 %v642_v4 }
 0xc1a   :  { %v485_v12 = vpop.permute.xlu2 %484 }
 0xc1b   :  { %796 = vmatmul.msk.f32.vlgmr.msra.gmra.mxu3 %vm53_vm2, %v485_v12  ;;  %v740_v12 = vld [vmem:[%s1179_s12 + $0x18] sm:$0xff] }
 0xc1c   :  { %800 = vmatpush.msk.msra.mxu3 %vm683_vm3, %v678_v5 }
 0xc1e   :  { %702 = vmatpush.msra.mxu3 %v677_v9 }
 0xc9e   :  { %v505_v15 = vpop.f32.mrf.mxu3 }
 0xc9f   :  { %v506_v16 = vadd.f32 %v505_v15, %v213_v14 }
 0xca1   :  { %847 = vtanh.f32 %v506_v16  ;;  %v508_v18 = vmul.f32 0.5, %v506_v16 }
 0xca3   :  { %849 = vtanh.f32 %v508_v18  ;;  %v738_v18 = vld [vmem:[%s1179_s12 + $0x8] sm:$0xff] }
 0xca7   :  { %v848_v17 = vpop.eup %847 }
 0xca8   :  { %515 = vrot.lane.b32.xlu0 %v848_v17, %s866_s29  ;;  %v739_v17 = vld [vmem:[%s1179_s12 + $0x10] sm:$0xff] }
 0xca9   :  { %v850_v19 = vpop.eup %849 }
 0xcaa   :  { %v510_v20 = vmul.f32 0.5, %v850_v19  ;;  %v737_v19 = vld [vmem:[%s1179_s12] sm:$0xff] }
 0xcac   :  { %v511_v21 = vadd.f32 0.5, %v510_v20  ;;  %v19_v20 = vstv %s1181_s13 }
 0xcad   :  { %20 = vst [vmem:[#allocation5] sm:$0x1] %v19_v20 }
 0xcae   :  { %v513_v24 = vmul.f32 %v511_v21, %v474_v8 }
 0xd1a   :  { %v516_v22 = vpop.permute.xlu0 %515 }
 0xd1b   :  { %v518_v23 = vmul.f32 %v516_v22, %v511_v21  ;;  %v815_v22 = vld [vmem:[%s1180_s11] ss:$0 sm:$0xff] }
 0xd1d   :  { %520 = vrot.lane.b32.xlu1 %v518_v23, %s867_s30 }
 0xd8f   :  { %v521_v25 = vpop.permute.xlu1 %520 }
 0xd90   :  { %v523_v28 = vadd.f32 %v521_v25, %v513_v24 }
 0xd92   :  { %851 = vtanh.f32 %v523_v28 }
 0xd98   :  { %v852_v30 = vpop.eup %851 }
 0xd99   :  { %526 = vrot.lane.b32.xlu2 %v852_v30, %s866_s29  ;;  %v816_v30 = vld [vmem:[#allocation5] ss:$0 sm:$0xff] }
 0xdf3   :  { %v527_v31 = vpop.permute.xlu2 %526 }
 0xdf4   :  { %v529_v33 = vmul.f32 %v527_v31, %v511_v21 }
 0xdf6   :  { %533 = vrot.lane.b32.xlu0 %v529_v33, %s867_s30 }
 0xe68   :  { %v534_v34 = vpop.permute.xlu0 %533 }
 0xe69   :  { %797 = vmatmul.msk.f32.vlgmr.msra.gmra.mxu2 %vm53_vm2, %v534_v34 }
 0xe6a   :  { %725 = vmatpush.msra.mxu2 %v675_v6 }
 0xe6c   :  { %726 = vmatpush.msra.mxu2 %v674_v10 }
 0xeec   :  { %v554_v37 = vpop.f32.mrf.mxu2 }
 0xeed   :  { %v555_v38 = vadd.f32 %v554_v37, %v216_v36 }
 0xeef   :  { %853 = vtanh.f32 %v555_v38  ;;  %v557_v40 = vmul.f32 0.5, %v555_v38 }
 0xef1   :  { %855 = vtanh.f32 %v557_v40 }
 0xef5   :  { %v854_v39 = vpop.eup %853 }
 0xef6   :  { %564 = vrot.lane.b32.xlu1 %v854_v39, %s866_s29 }
 0xef7   :  { %v856_v41 = vpop.eup %855 }
 0xef8   :  { %v559_v42 = vmul.f32 0.5, %v856_v41 }
 0xefa   :  { %v560_v43 = vadd.f32 0.5, %v559_v42 }
 0xefc   :  { %v562_v48 = vmul.f32 %v560_v43, %v523_v28 }
 0xf68   :  { %v565_v45 = vpop.permute.xlu1 %564 }
 0xf69   :  { %v567_v47 = vmul.f32 %v565_v45, %v560_v43 }
 0xf6b   :  { %569 = vrot.lane.b32.xlu2 %v567_v47, %s867_s30 }
 0xfc5   :  { %v570_v49 = vpop.permute.xlu2 %569 }
 0xfc6   :  { %v572_v50 = vadd.f32 %v570_v49, %v562_v48 }
 0xfc8   :  { %857 = vtanh.f32 %v572_v50 }
 0xfce   :  { %v858_v44 = vpop.eup %857 }
 0xfcf   :  { %575 = vrot.lane.b32.xlu0 %v858_v44, %s866_s29 }
0x1041   :  { %v576_v51 = vpop.permute.xlu0 %575 }
0x1042   :  { %v578_v52 = vmul.f32 %v576_v51, %v560_v43 }
0x1044   :  { %582 = vrot.lane.b32.xlu1 %v578_v52, %s867_s30 }
0x10b6   :  { %v583_v26 = vpop.permute.xlu1 %582 }
0x10b7   :  { %798 = vmatmul.msk.f32.vlgmr.msrb.gmra.mxu3 %vm53_vm2, %v583_v26 }
0x10b8   :  { %760 = vmatpush.msrb.mxu3 %v740_v12 }
0x10ba   :  { %761 = vmatpush.msrb.mxu3 %v739_v17 }
0x10bc   :  { %762 = vmatpush.msrb.mxu3 %v738_v18 }
0x10be   :  { %763 = vmatpush.msrb.mxu3 %v737_v19 }
0x10bf   :  { %801 = vmatmul.msk.f32.vlgmr.msra.gmra.mxu3 %vm679_vm4, %v676_v11 }
0x113a   :  { %v603_v53 = vpop.f32.mrf.mxu3 }
0x113b   :  { %v604_v27 = vadd.f32 %v603_v53, %v1051_v46 }
0x113d   :  { %859 = vtanh.f32 %v604_v27  ;;  %v606_v32 = vmul.f32 0.5, %v604_v27 }
0x113f   :  { %861 = vtanh.f32 %v606_v32 }
0x1142   :  { %v704_v21 = vpop.f32.mrf.mxu3 }
0x1143   :  { %v860_v29 = vpop.eup %859 }
0x1144   :  { %613 = vrot.lane.b32.xlu2 %v860_v29, %s866_s29 }
0x1145   :  { %v862_v54 = vpop.eup %861 }
0x1146   :  { %v608_v55 = vmul.f32 0.5, %v862_v54 }
0x1148   :  { %v609_v56 = vadd.f32 0.5, %v608_v55 }
0x114a   :  { %v611_v59 = vmul.f32 %v609_v56, %v572_v50 }
0x119e   :  { %v614_v57 = vpop.permute.xlu2 %613 }
0x119f   :  { %v616_v58 = vmul.f32 %v614_v57, %v609_v56 }
0x11a1   :  { %618 = vrot.lane.b32.xlu0 %v616_v58, %s867_s30 }
0x1213   :  { %v619_v60 = vpop.permute.xlu0 %618 }
0x1214   :  { %v621_v61 = vadd.f32 %v619_v60, %v611_v59 }
0x1216   :  { %863 = vtanh.f32 %v621_v61  ;;  %634 = vrot.lane.b32.xlu0 %v621_v61, %s868_s5 }
0x121c   :  { %v864_v46 = vpop.eup %863 }
0x121d   :  { %624 = vrot.lane.b32.xlu1 %v864_v46, %s866_s29 }
0x1288   :  { %v635_v62 = vpop.permute.xlu0 %634 }
0x1289   :  { %637 = vst.msk [vmem:[#allocation4] sm:$0xff] %vm53_vm2, %v635_v62 }
0x128f   :  { %v625_v63 = vpop.permute.xlu1 %624 }
0x1290   :  { %v627_v0 = vmul.f32 %v625_v63, %v609_v56 }
0x1292   :  { %629 = vrot.lane.b32.xlu2 %v627_v0, %s867_s30 }
0x12ec   :  { %v630_v7 = vpop.permute.xlu2 %629 }
0x12ed   :  { %632 = vst.msk [vmem:[#allocation3] sm:$0xff] %vm53_vm2, %v630_v7 }
0x12f4   :  { %v641_v8 = vld [vmem:[#allocation3] sm:$0xff] }
0x12f5   :  { %799 = vmatmul.msk.f32.vlgmr.msrb.gmra.mxu2 %vm53_vm2, %v641_v8 }
0x1378   :  { %v670_v14 = vpop.f32.mrf.mxu2 }
0x1379   :  { %v671_v15 = vadd.f32 %v814_v13, %v670_v14 }
0x137b   :  { %v673_v16 = vmax.f32 %v671_v15, 0.0 }
0x137d   :  { %802 = vmatmul.msk.f32.vlgmr.msra.gmra.mxu2 %vm707_vm5, %v673_v16 }
0x1400   :  { %v728_v23 = vpop.f32.mrf.mxu2 }
0x1401   :  { %v729_v24 = vadd.f32 %v728_v23, %v704_v21 }
0x1403   :  { %v735_v25 = vadd.f32 %v815_v22, %v729_v24 }
0x1405   :  { %v736_v28 = vmax.f32 %v735_v25, 0.0 }
0x1407   :  { %803 = vmatmul.msk.f32.vlgmr.msrb.gmra.mxu3 %vm53_vm2, %v736_v28 }
0x148a   :  { %v765_v31 = vpop.f32.mrf.mxu3 }
0x148b   :  { %v766_v33 = vadd.f32 %v816_v30, %v765_v31 }
0x148d   :  { %769 = vst.msk [vmem:[%s1182_s14] sm:$0xff] %vm768_vm6, %v766_v33 }

</bundles_post_ra>
